<compile_context>
chip_gen: v5e
topology: v5e:2x2
jax: 0.10.0
libtpu: 0.0.40
codegen_flags: <defaults>
</compile_context>

<pallas_src>
import jax
import jax.numpy as jnp
from jax.experimental import pallas as pl
from jax.experimental.pallas import tpu as pltpu

_MIB = 1024 * 1024


def _round_up(n, m):
    return ((n + m - 1) // m) * m


def _vmem_budget_bytes():
    """Capacity-aware scoped-VMEM budget with compiler headroom.

    v5e/v6e: 128 MiB physical -> ~96 MiB budget.
    v7x:      64 MiB per TC   -> ~48 MiB budget (each TC needs its own copy
    of everything under megacore row sharding).
    """
    try:
        cap = int(pltpu.get_tpu_info().vmem_capacity_bytes)
    except Exception:  # not on TPU / info unavailable: assume the smallest (v7x)
        cap = 64 * _MIB
    return min(100 * _MIB, (cap * 3) // 4)


def _vmem_usage(tm, t_ff, d_model, x_bytes, out_bytes):
    """Rough per-TensorCore VMEM footprint of one pipeline configuration."""
    u = 0
    u += 2 * tm * d_model * x_bytes        # x tile, double-buffered
    u += 2 * tm * d_model * out_bytes      # out tile, double-buffered
    u += 2 * d_model * t_ff * 2            # W1 chunk (bf16), double-buffered
    u += 2 * t_ff * d_model * 2            # W2 chunk (bf16), double-buffered
    u += tm * d_model * 4                  # f32 accumulator scratch
    u += tm * t_ff * (4 + 2)               # live h (f32) + bf16 copy
    u += 4 * d_model * 4                   # gamma/beta tiles
    return u


def _pick_tiles(rows, d_model, d_ff, x_bytes, out_bytes, budget,
                tm_cap=512, t_ff_cap=4096):
    """Choose (tm, t_ff) = (row tile, d_ff chunk) that fit the VMEM budget.

    Row tile: largest divisor of rows that is a multiple of 8 (no wrapper pad);
    d_ff chunk: divisor of d_ff, multiple of 256 preferred (full MXU depth on
    v6e/v7x), else 128 (v5e), else the whole d_ff.
    """
    tm_opts = [d for d in range(8, min(rows, tm_cap) + 1, 8) if rows % d == 0]
    if not tm_opts:  # rows has no usable divisor -> pad fallback
        tm_opts = [min(tm_cap, _round_up(rows, 8))]

    ff_opts = [c for c in range(256, min(d_ff, t_ff_cap) + 1, 256) if d_ff % c == 0]
    if not ff_opts:
        ff_opts = [c for c in range(128, min(d_ff, t_ff_cap) + 1, 128) if d_ff % c == 0]
    if not ff_opts:
        ff_opts = [d_ff]

    for tm in sorted(tm_opts, reverse=True):
        for t_ff in sorted(ff_opts, reverse=True):
            if _vmem_usage(tm, t_ff, d_model, x_bytes, out_bytes) <= budget:
                return tm, t_ff
    return min(tm_opts), min(ff_opts)


def _ffn_ln_kernel(x_ref, w1_ref, w2_ref, gamma_ref, beta_ref, o_ref, acc_ref):
    """Grid = (row_tiles, d_ff_chunks); d_ff axis is the reduction ('arbitrary')."""
    k = pl.program_id(1)
    nk = pl.num_programs(1)

    @pl.when(k == 0)
    def _():
        acc_ref[...] = jnp.zeros_like(acc_ref)

    # FFN chunk: relu(x @ W1[:, chunk]) @ W2[chunk, :], bf16 MXU operands,
    # f32 accumulation into the scratch. ReLU is columnwise over d_ff, so
    # applying it per chunk is exact.
    xb = x_ref[...].astype(jnp.bfloat16)
    h = jnp.dot(xb, w1_ref[...], preferred_element_type=jnp.float32)
    h = jnp.maximum(h, 0.0).astype(jnp.bfloat16)
    acc_ref[...] += jnp.dot(h, w2_ref[...], preferred_element_type=jnp.float32)

    @pl.when(k == nk - 1)
    def _():
        # Residual add + LayerNorm over d_model, f32, eps = 1e-5 (nn.LayerNorm).
        y = acc_ref[...] + x_ref[...].astype(jnp.float32)
        mean = jnp.mean(y, axis=-1, keepdims=True)
        centered = y - mean
        var = jnp.mean(centered * centered, axis=-1, keepdims=True)
        normed = centered * jax.lax.rsqrt(var + 1e-5)
        o_ref[...] = (normed * gamma_ref[...] + beta_ref[...]).astype(o_ref.dtype)


def poswise_ffn(x, w1, w2, gamma, beta, *, tm=None, t_ff=None,
                vmem_limit_bytes=None):
    """x: [B, S, d_model]; w1: [d_model, d_ff]; w2: [d_ff, d_model];
    gamma/beta: [d_model]. Returns [B, S, d_model] (same dtype as x).
    Pass w1/w2 already in bf16 to avoid a per-call cast in the hot path."""
    B, S, d_model = x.shape
    d_ff = w1.shape[1]
    assert w1.shape == (d_model, d_ff) and w2.shape == (d_ff, d_model)
    assert gamma.shape == (d_model,) and beta.shape == (d_model,)

    rows = B * S
    x_bytes = jnp.dtype(x.dtype).itemsize
    budget = vmem_limit_bytes if vmem_limit_bytes is not None else _vmem_budget_bytes()

    auto_tm, auto_tff = _pick_tiles(rows, d_model, d_ff, x_bytes, x_bytes, budget)
    tm_eff = int(tm) if tm is not None else auto_tm
    t_ff_eff = int(t_ff) if t_ff is not None else auto_tff
    assert d_ff % t_ff_eff == 0, "t_ff must divide d_ff"

    # Rare fallback: pad rows only if tm does not divide them.
    # TODO(synk): replace the pad fallback with an in-kernel masked tail store.
    rows_p = rows if rows % tm_eff == 0 else _round_up(rows, tm_eff)
    x2d = x.reshape(rows, d_model)
    if rows_p != rows:
        x2d = jnp.pad(x2d, ((0, rows_p - rows), (0, 0)))

    # Weights: bf16 MXU operands. Cast only if the caller did not store bf16
    # (in production, hoist this cast out of the step loop entirely).
    w1b = w1 if w1.dtype == jnp.bfloat16 else w1.astype(jnp.bfloat16)
    w2b = w2 if w2.dtype == jnp.bfloat16 else w2.astype(jnp.bfloat16)
    gamma2d = gamma.reshape(1, d_model).astype(jnp.float32)
    beta2d = beta.reshape(1, d_model).astype(jnp.float32)

    grid = (rows_p // tm_eff, d_ff // t_ff_eff)

    grid_spec = pltpu.PrefetchScalarGridSpec(
        num_scalar_prefetch=0,
        grid=grid,
        in_specs=[
            pl.BlockSpec((tm_eff, d_model), lambda i, k: (i, 0)),     # x tile
            pl.BlockSpec((d_model, t_ff_eff), lambda i, k: (0, k)),   # W1 chunk
            pl.BlockSpec((t_ff_eff, d_model), lambda i, k: (k, 0)),   # W2 chunk
            pl.BlockSpec((1, d_model), lambda i, k: (0, 0)),          # gamma
            pl.BlockSpec((1, d_model), lambda i, k: (0, 0)),          # beta
        ],
        out_specs=pl.BlockSpec((tm_eff, d_model), lambda i, k: (i, 0)),
        scratch_shapes=[pltpu.VMEM((tm_eff, d_model), jnp.float32)],
    )

    cost = pl.CostEstimate(
        flops=4 * rows * d_model * d_ff,              # two matmuls
        transcendentals=rows,                         # rsqrt per row
        bytes_accessed=(rows * d_model * 2 * x_bytes  # activations in + out
                        + 2 * d_model * d_ff * 2),    # bf16 weights (once)
    )

    out2d = pl.pallas_call(
        _ffn_ln_kernel,
        out_shape=jax.ShapeDtypeStruct((rows_p, d_model), x.dtype),
        grid_spec=grid_spec,
        compiler_params=pltpu.CompilerParams(
            # rows parallel (megacore-shardable), d_ff reduction arbitrary.
            dimension_semantics=("parallel", "arbitrary"),
            vmem_limit_bytes=budget,
        ),
        cost_estimate=cost,
    )(x2d, w1b, w2b, gamma2d, beta2d)

    if rows_p != rows:
        out2d = out2d[:rows]
    return out2d.reshape(B, S, d_model)


if __name__ == "__main__":
    # Small shapes consistent with the module's forward: [batch, seq, d_model].
    B, S, d_model, d_ff = 2, 192, 128, 512

    key = jax.random.PRNGKey(0)
    kx, k1, k2 = jax.random.split(key, 3)

    x = jax.random.normal(kx, (B, S, d_model), dtype=jnp.float32)
    # nn.Linear(d, f, bias=False): y = x @ W.T -> store the transposed matrices.
    # Weights are prepared as bf16 ONCE here (hoisted cast), as the kernel expects.
    w1 = (jax.random.normal(k1, (d_model, d_ff), dtype=jnp.float32) * 0.05
          ).astype(jnp.bfloat16)
    w2 = (jax.random.normal(k2, (d_ff, d_model), dtype=jnp.float32) * 0.05
          ).astype(jnp.bfloat16)
    # nn.LayerNorm default init: weight = ones, bias = zeros
    gamma = jnp.ones((d_model,), dtype=jnp.float32)
    beta = jnp.zeros((d_model,), dtype=jnp.float32)

    # Explicit small tiles so the run exercises the multi-row-tile (grid=3) and
    # multi-d_ff-chunk (grid=2) accumulation + pl.when epilogue paths.
    out = jax.block_until_ready(
        poswise_ffn(x, w1, w2, gamma, beta, tm=128, t_ff=256))

    # Pure-JAX reference with the same numerics contract (bf16 matmul operands,
    # f32 accumulation, f32 residual + LayerNorm with eps=1e-5).
    x2 = x.reshape(-1, d_model)
    h = jnp.dot(x2.astype(jnp.bfloat16), w1, preferred_element_type=jnp.float32)
    h = jnp.maximum(h, 0.0).astype(jnp.bfloat16)
    y = jnp.dot(h, w2, preferred_element_type=jnp.float32) + x2
    mu = jnp.mean(y, axis=-1, keepdims=True)
    var = jnp.mean((y - mu) ** 2, axis=-1, keepdims=True)
    ref = ((y - mu) * jax.lax.rsqrt(var + 1e-5) * gamma + beta).reshape(B, S, d_model)

    assert out.shape == x.shape and out.dtype == x.dtype
    err = float(jnp.max(jnp.abs(out - ref)))
    assert jnp.allclose(out, ref, atol=2e-3, rtol=2e-3), f"max abs err {err}"

    print("KERNEL_OK")
</pallas_src>

<mosaic_0001>
module attributes {stable_mosaic.version = 11 : i64} {
  func.func @_ffn_ln_kernel(%arg0: i32, %arg1: i32, %arg2: memref<128x128xf32, #tpu.memory_space<vmem>>, %arg3: memref<128x256xbf16, #tpu.memory_space<vmem>>, %arg4: memref<256x128xbf16, #tpu.memory_space<vmem>>, %arg5: memref<1x128xf32, #tpu.memory_space<vmem>>, %arg6: memref<1x128xf32, #tpu.memory_space<vmem>>, %arg7: memref<128x128xf32, #tpu.memory_space<vmem>>, %arg8: memref<128x128xf32, #tpu.memory_space<vmem>>) attributes {dimension_semantics = [#tpu.dimension_semantics<parallel>, #tpu.dimension_semantics<arbitrary>], iteration_bounds = array<i64: 3, 2>, scalar_prefetch = 0 : i64, scratch_operands = 1 : i64, tpu.core_type = #tpu.core_type<tc>, window_params = [{transform_indices = @transform_0, window_bounds = array<i64: 128, 128>}, {transform_indices = @transform_1, window_bounds = array<i64: 128, 256>}, {transform_indices = @transform_2, window_bounds = array<i64: 256, 128>}, {pipeline_mode = #tpu.pipeline_mode<synchronous>, transform_indices = @transform_3, window_bounds = array<i64: 1, 128>}, {pipeline_mode = #tpu.pipeline_mode<synchronous>, transform_indices = @transform_4, window_bounds = array<i64: 1, 128>}, {transform_indices = @transform_5, window_bounds = array<i64: 128, 128>}]} {
    %c0_i32 = arith.constant 0 : i32
    %0 = arith.cmpi eq, %arg1, %c0_i32 : i32
    %1 = arith.extui %0 : i1 to i32
    %c0_i32_0 = arith.constant 0 : i32
    %2 = arith.cmpi ne, %1, %c0_i32_0 : i32
    scf.if %2 {
      %cst_13 = arith.constant 0.000000e+00 : f32
      %18 = vector.broadcast %cst_13 : f32 to vector<128x128xf32>
      %c0_14 = arith.constant 0 : index
      %c0_15 = arith.constant 0 : index
      %19 = vector.load %arg8[%c0_14, %c0_15] : memref<128x128xf32, #tpu.memory_space<vmem>>, vector<128x128xf32>
      tpu.vector_store %arg8[%c0_14, %c0_15], %18 {strides = array<i32>} : memref<128x128xf32, #tpu.memory_space<vmem>>, vector<128x128xf32>,
    } else {
    }
    %c0 = arith.constant 0 : index
    %c0_1 = arith.constant 0 : index
    %3 = vector.load %arg2[%c0, %c0_1] : memref<128x128xf32, #tpu.memory_space<vmem>>, vector<128x128xf32>
    %4 = arith.truncf %3 : vector<128x128xf32> to vector<128x128xbf16>
    %c0_2 = arith.constant 0 : index
    %c0_3 = arith.constant 0 : index
    %5 = vector.load %arg3[%c0_2, %c0_3] : memref<128x256xbf16, #tpu.memory_space<vmem>>, vector<128x256xbf16>
    %cst = arith.constant dense<0.000000e+00> : vector<128x256xf32>
    %6 = tpu.matmul %4, %5, %cst {dimension_numbers = #tpu.dot_dimension_numbers<[1], [0], [0], [1], [0, 0, 1, 1], [], []>} : vector<128x128xbf16>, vector<128x256xbf16>, vector<128x256xf32> -> vector<128x256xf32>
    %cst_4 = arith.constant 0.000000e+00 : f32
    %7 = vector.broadcast %cst_4 : f32 to vector<128x256xf32>
    %8 = arith.maximumf %6, %7 : vector<128x256xf32>
    %9 = arith.truncf %8 : vector<128x256xf32> to vector<128x256xbf16>
    %c0_5 = arith.constant 0 : index
    %c0_6 = arith.constant 0 : index
    %10 = vector.load %arg8[%c0_5, %c0_6] : memref<128x128xf32, #tpu.memory_space<vmem>>, vector<128x128xf32>
    %c0_7 = arith.constant 0 : index
    %c0_8 = arith.constant 0 : index
    %11 = vector.load %arg4[%c0_7, %c0_8] : memref<256x128xbf16, #tpu.memory_space<vmem>>, vector<256x128xbf16>
    %cst_9 = arith.constant dense<0.000000e+00> : vector<128x128xf32>
    %12 = tpu.matmul %9, %11, %cst_9 {dimension_numbers = #tpu.dot_dimension_numbers<[1], [0], [0], [1], [0, 0, 1, 1], [], []>} : vector<128x256xbf16>, vector<256x128xbf16>, vector<128x128xf32> -> vector<128x128xf32>
    %13 = arith.addf %10, %12 : vector<128x128xf32>
    %c0_10 = arith.constant 0 : index
    %c0_11 = arith.constant 0 : index
    %14 = vector.load %arg8[%c0_10, %c0_11] : memref<128x128xf32, #tpu.memory_space<vmem>>, vector<128x128xf32>
    tpu.vector_store %arg8[%c0_10, %c0_11], %13 {strides = array<i32>} : memref<128x128xf32, #tpu.memory_space<vmem>>, vector<128x128xf32>,
    %c1_i32 = arith.constant 1 : i32
    %15 = arith.cmpi eq, %arg1, %c1_i32 : i32
    %16 = arith.extui %15 : i1 to i32
    %c0_i32_12 = arith.constant 0 : i32
    %17 = arith.cmpi ne, %16, %c0_i32_12 : i32
    scf.if %17 {
      %c0_13 = arith.constant 0 : index
      %c0_14 = arith.constant 0 : index
      %18 = vector.load %arg8[%c0_13, %c0_14] : memref<128x128xf32, #tpu.memory_space<vmem>>, vector<128x128xf32>
      %c0_15 = arith.constant 0 : index
      %c0_16 = arith.constant 0 : index
      %19 = vector.load %arg2[%c0_15, %c0_16] : memref<128x128xf32, #tpu.memory_space<vmem>>, vector<128x128xf32>
      %20 = arith.addf %18, %19 : vector<128x128xf32>
      %cst_17 = arith.constant dense<0.000000e+00> : vector<128xf32>
      %21 = vector.multi_reduction <add>, %20, %cst_17 [1] : vector<128x128xf32> to vector<128xf32>
      %22 = vector.shape_cast %21 : vector<128xf32> to vector<128x1xf32>
      %cst_18 = arith.constant 1.280000e+02 : f32
      %23 = vector.broadcast %cst_18 : f32 to vector<128x1xf32>
      %24 = arith.divf %22, %23 : vector<128x1xf32>
      %25 = vector.broadcast %24 : vector<128x1xf32> to vector<128x128xf32>
      %26 = arith.subf %20, %25 : vector<128x128xf32>
      %27 = arith.mulf %26, %26 : vector<128x128xf32>
      %cst_19 = arith.constant dense<0.000000e+00> : vector<128xf32>
      %28 = vector.multi_reduction <add>, %27, %cst_19 [1] : vector<128x128xf32> to vector<128xf32>
      %29 = vector.shape_cast %28 : vector<128xf32> to vector<128x1xf32>
      %cst_20 = arith.constant 1.280000e+02 : f32
      %30 = vector.broadcast %cst_20 : f32 to vector<128x1xf32>
      %31 = arith.divf %29, %30 : vector<128x1xf32>
      %cst_21 = arith.constant 9.99999974E-6 : f32
      %32 = vector.broadcast %cst_21 : f32 to vector<128x1xf32>
      %33 = arith.addf %31, %32 : vector<128x1xf32>
      %34 = math.rsqrt %33 : vector<128x1xf32>
      %35 = vector.broadcast %34 : vector<128x1xf32> to vector<128x128xf32>
      %36 = arith.mulf %26, %35 : vector<128x128xf32>
      %c0_22 = arith.constant 0 : index
      %c0_23 = arith.constant 0 : index
      %37 = vector.load %arg5[%c0_22, %c0_23] : memref<1x128xf32, #tpu.memory_space<vmem>>, vector<1x128xf32>
      %38 = vector.broadcast %37 : vector<1x128xf32> to vector<128x128xf32>
      %39 = arith.mulf %36, %38 : vector<128x128xf32>
      %c0_24 = arith.constant 0 : index
      %c0_25 = arith.constant 0 : index
      %40 = vector.load %arg6[%c0_24, %c0_25] : memref<1x128xf32, #tpu.memory_space<vmem>>, vector<1x128xf32>
      %41 = vector.broadcast %40 : vector<1x128xf32> to vector<128x128xf32>
      %42 = arith.addf %39, %41 : vector<128x128xf32>
      %c0_26 = arith.constant 0 : index
      %c0_27 = arith.constant 0 : index
      %43 = vector.load %arg7[%c0_26, %c0_27] : memref<128x128xf32, #tpu.memory_space<vmem>>, vector<128x128xf32>
      tpu.vector_store %arg7[%c0_26, %c0_27], %42 {strides = array<i32>} : memref<128x128xf32, #tpu.memory_space<vmem>>, vector<128x128xf32>,
    } else {
    }
    return
  }
  func.func @transform_0(%arg0: i32, %arg1: i32) -> (i32, i32) {
    %c0_i32 = arith.constant 0 : i32
    %c0_i32_0 = arith.constant 0 : i32
    return %arg0, %c0_i32 : i32, i32
  }
  func.func @transform_1(%arg0: i32, %arg1: i32) -> (i32, i32) {
    %c0_i32 = arith.constant 0 : i32
    %c0_i32_0 = arith.constant 0 : i32
    return %c0_i32, %arg1 : i32, i32
  }
  func.func @transform_2(%arg0: i32, %arg1: i32) -> (i32, i32) {
    %c0_i32 = arith.constant 0 : i32
    %c0_i32_0 = arith.constant 0 : i32
    return %arg1, %c0_i32 : i32, i32
  }
  func.func @transform_3(%arg0: i32, %arg1: i32) -> (i32, i32) {
    %c0_i32 = arith.constant 0 : i32
    %c0_i32_0 = arith.constant 0 : i32
    %c0_i32_1 = arith.constant 0 : i32
    return %c0_i32, %c0_i32_0 : i32, i32
  }
  func.func @transform_4(%arg0: i32, %arg1: i32) -> (i32, i32) {
    %c0_i32 = arith.constant 0 : i32
    %c0_i32_0 = arith.constant 0 : i32
    %c0_i32_1 = arith.constant 0 : i32
    return %c0_i32, %c0_i32_0 : i32, i32
  }
  func.func @transform_5(%arg0: i32, %arg1: i32) -> (i32, i32) {
    %c0_i32 = arith.constant 0 : i32
    %c0_i32_0 = arith.constant 0 : i32
    return %arg0, %c0_i32 : i32, i32
  }
}

</mosaic_0001>

<bundles_post_ra>
// kernel: tpu_custom_call.1
= control target key start
LH: loop header
LB: loop body
LE: loop exit
PB: predicated region body
PF: predicated region fallthrough
CT: control target
= control target key end

     0   :  { %s2810_s0 = inlined_call_operand.hbm [shape: f32[384,128], index: 0, kind: input, shape index: {}]   ;;  %s2811_s1 = inlined_call_operand.hbm [shape: bf16[128,512], index: 1, kind: input, shape index: {}]   ;;  %s2812_s2 = inlined_call_operand.hbm [shape: bf16[512,128], index: 2, kind: input, shape index: {}]   ;;  %s2813_s3 = inlined_call_operand.vmem [shape: f32[1,128], index: 3, kind: input, shape index: {}]   ;;  %s2814_s4 = inlined_call_operand.vmem [shape: f32[1,128], index: 4, kind: input, shape index: {}]   ;;  %s2815_s5 = inlined_call_operand.hbm [shape: f32[384,128], index: 5, kind: output, shape index: {}]  }
   0x1   :  { %2828 = sst [smem:[#allocation24_spill]] %s2811_s1 }
   0x2   :  { %2829 = sst [smem:[#allocation25_spill]] %s2813_s3 }
   0x3   :  { %2830 = sst [smem:[#allocation26_spill]] %s2814_s4 }
   0x4   :  { %2831 = sst [smem:[#allocation27_spill]] %s2815_s5 }
   0x5   :  { %10 = vsyncpa [#allocation4], 0 }
   0x6   :  { %12 = vsyncpa [#allocation4 + $0x1], 0 }
   0x7   :  { %13 = vsyncpa [#allocation7], 0 }
   0x8   :  { %15 = vsyncpa [#allocation7 + $0x1], 0 }
   0x9   :  { %16 = vsyncpa [#allocation5], 0 }
   0xa   :  { %18 = vsyncpa [#allocation5 + $0x1], 0  ;;  %s2083_s18 = smov 0   ;;  %s2085_s19 = smov 0  }
   0xb   :  { %s2087_s20 = smov 0   ;;  %s2089_s21 = smov 0  }
   0xc   :  { %s2091_s22 = smov 0   ;;  %s2093_s23 = smov 0  }
   0xd   :  { %s2095_s24 = smov 0   ;;  %s2097_s25 = smov 0  }
   0xe   :  { %s2099_s26 = smov 0   ;;  %s2101_s27 = smov 0  }
   0xf   :  { %s2103_s28 = smov 0  }
  0x10 LB: > { %2832 = sst [smem:[#allocation13_spill]] %s2010_s20  ;;  %s33_s29 = sadd.s32 1, %s2034_s26  ;;  %s2042_s28 = sphi %s2103_s28, %s24_s28   ;;  %s2038_s27 = sphi %s2101_s27, %s2869_s27   ;;  %s2034_s26 = sphi %s2099_s26, %s2875_s26   ;;  %s2030_s25 = sphi %s2097_s25, %s2867_s25   ;;  %s2026_s24 = sphi %s2095_s24, %s2874_s24   ;;  %s2022_s23 = sphi %s2093_s23, %s2866_s23   ;;  %s2018_s22 = sphi %s2091_s22, %s2873_s22   ;;  %s2014_s21 = sphi %s2089_s21, %s2872_s21   ;;  %s2010_s20 = sphi %s2087_s20, %s2864_s20   ;;  %s2006_s19 = sphi %s2085_s19, %s2871_s19   ;;  %s2002_s18 = sphi %s2083_s18, %s2870_s18  }
  0x11   : > { %2833 = sst [smem:[#allocation14_spill]] %s2014_s21  ;;  %p51_p0 = scmp.eq.s32.totalorder %s2042_s28, 0 }
  0x12   : > { %2834 = sst [smem:[#allocation15_spill]] %s2022_s23  ;;  %p2140_p1 = scmp.ge.s32.totalorder %s33_s29, 2 }
  0x13   : > { %2835 = sst [smem:[#allocation16_spill]] %s2030_s25  ;;  %s69_s6 = sadd.s32 1, %s2010_s20 }
  0x14   : > { %2836 = sst [smem:[#allocation17_spill]] %s2038_s27  ;;  %p76_p2 = scmp.ne.s32.totalorder %s2010_s20, %s2006_s19 }
  0x15   : > { %p82_p3 = scmp.ne.s32.totalorder %s2006_s19, %s2002_s18  ;;  %s2877_s29 = smov (%p2140_p1, %s33_s29), 0 }
  0x16   : > { %2838 = sst [smem:[#allocation18_spill]] %s2877_s29  ;;  %p2155_p4 = por %p76_p2, %p51_p0 }
  0x17   : > { %s66_s8 = ssub.s32 %s2034_s26, %s2877_s29  ;;  %p1691_p5 = scmp.lt.s32.totalorder %s2042_s28, 6 }
  0x18   : > { %p67_p6 = scmp.eq.s32.totalorder %s66_s8, 0  ;;  %s228_s9 = sand.u32 1, %s2042_s28  }
  0x19   : > { %s230_s11 = sand.u32 1, %s2010_s20   ;;  %s1634_s13 = sshll.u32 %s2034_s26, 3 }
  0x1a   : > { %s2164_s10 = scalar_select %p67_p6, %s2010_s20, %s69_s6  }
  0x1b   : > { %s2167_s12 = sshll.u32 %s230_s11, 7  ;;  %s2841_s1 = sld [smem:[#allocation24_spill]] }
  0x1c   : > { %2840 = sst [smem:[#allocation19_spill]] %s2164_s10  ;;  %s232_s29 = scalar_lea.vmem [#allocation6], %s2167_s12 }
  0x1d   : > { %s240_s5 = sshll.u32 %s232_s29, 4  ;;  %p2178_p7 = pnand %p1691_p5, %p2155_p4  ;;  %s241_s5 = int_to_ptr.vmem [resolvable:$true] %s240_s5 }
  0x1e   : > { %p1493_p8 = scmp.ge.s32.totalorder %s2042_s28, 1  ;;  %p270_p9 = scmp.lt.s32.totalorder %s2042_s28, 7 }
  0x1f   : > { %s2184_s8 = scalar_lea.sflag [#allocation7], %s228_s9  ;;  %s2044_s29 = smov 256  }
  0x20   : > { %s2818_s11 = smov 128   ;;  %p2191_p10 = pnand %p1493_p8, %p270_p9 }
  0x21   : > { %s237_s16 = scalar_lea.hbm %s2841_s1, %s1634_s13  ;;  %s2819_s13 = smov 8  }
  0x22   : > { %s238_s17 = sshll.u32 %s237_s16, 4  ;;  %s2196_s14 = sadd.s32 4294967295, %s2042_s28   ;;  %s239_s17 = int_to_ptr.hbm [resolvable:$true] %s238_s17 }
  0x23   : > { %1683 = dma.hbm_to_vmem [thread:$0]  (!%p2178_p7), %s239_s17, 2048, %s241_s5, %s2184_s8, %s2044_s29, %s2818_s11, %s2819_s13  }
  0x24   : > { %s1481_s9 = sadd.s32 4294967294, %s2042_s28   ;;  %s36_s15 = sadd.s32 1, %s2038_s27 }
  0x25   : > { %s43_s16 = sadd.s32 1, %s2022_s23  ;;  %s2879_s15 = smov (!%p2140_p1, %s36_s15), %s2038_s27 }
  0x26   : > { %p50_p11 = scmp.ne.s32.totalorder %s2022_s23, %s2018_s22  ;;  %p56_p12 = scmp.ne.s32.totalorder %s2018_s22, %s2014_s21 }
  0x27   : > { %p38_p13 = scmp.ge.s32.totalorder %s2879_s15, 3  ;;  %p57_p2 = scmp.eq.s32.totalorder %s2196_s14, 0 }
  0x28   : > { %p2211_p4 = por %p51_p0, %p50_p11  ;;  %p174_p6 = scmp.eq.s32.totalorder %s2196_s14, 5 }
  0x29   : > { %s2881_s15 = smov (%p38_p13, %s2879_s15), 0  ;;  %p2221_p8 = por %p57_p2, %p56_p12 }
  0x2a   : > { %2845 = sst [smem:[#allocation20_spill]] %s2881_s15  ;;  %p2228_p1 = por %p82_p3, %p57_p2 }
  0x2b   : > { %s40_s29 = ssub.s32 %s2038_s27, %s2881_s15  ;;  %p2234_p0 = por %p174_p6, %p50_p11 }
  0x2c   : > { %p41_p9 = scmp.eq.s32.totalorder %s40_s29, 0  ;;  %p180_p13 = scmp.eq.s32.totalorder %s1481_s9, 5 }
  0x2d   : > { %s2848_s11 = scalar_select %p2234_p0, 1, 0 }
  0x2e   : > { %s206_s13 = sand.u32 1, %s2022_s23   ;;  %s1633_s1 = sshll.u32 %s2038_s27, 7 }
  0x2f   : > { %2849 = sst [smem:[#allocation21_spill]] %s2848_s11  ;;  %p2246_p3 = por %p180_p13, %p56_p12 }
  0x30   : > { %s2241_s10 = scalar_select %p41_p9, %s2022_s23, %s43_s16  }
  0x31   : > { %s2851_s18 = scalar_select %p2246_p3, 1, 0 }
  0x32   : > { %2850 = sst [smem:[#allocation22_spill]] %s2241_s10  ;;  %s1484_s20 = sshll.u32 %s206_s13, 7 }
  0x33   : > { %2852 = sst [smem:[#allocation23_spill]] %s2851_s18  ;;  %s215_s4 = scalar_lea.hbm %s2810_s0, %s1633_s1 }
  0x34   : > { %s216_s3 = sshll.u32 %s215_s4, 4  ;;  %s210_s9 = scalar_lea.vmem [#allocation3], %s1484_s20  ;;  %s217_s3 = int_to_ptr.hbm [resolvable:$true] %s216_s3 }
  0x35   : > { %s218_s29 = sshll.u32 %s210_s9, 4  ;;  %p1678_p11 = pnand %p1691_p5, %p2211_p4  ;;  %s219_s29 = int_to_ptr.vmem [resolvable:$true] %s218_s29 }
  0x36   : > { %s1635_s16 = sshll.u32 %s2034_s26, 7  ;;  %s207_s18 = scalar_lea.sflag [#allocation4], %s206_s13 }
  0x37   : > { %s259_s23 = scalar_lea.hbm %s2812_s2, %s1635_s16  ;;  %s2853_s21 = smov 8  }
  0x38   : > { %s2854_s11 = smov 128   ;;  %s260_s1 = sshll.u32 %s259_s23, 4  ;;  %s261_s1 = int_to_ptr.hbm [resolvable:$true] %s260_s1 }
  0x39   : > { %1680 = dma.hbm_to_vmem [thread:$0]  (!%p1678_p11), %s217_s3, 2048, %s219_s29, %s207_s18, %s2854_s11, %s2854_s11, %s2853_s21  }
  0x3a   : > { %s254_s4 = scalar_lea.vmem [#allocation8], %s2167_s12  ;;  %s2047_s20 = smov 64  }
  0x3b   : > { %s262_s25 = sshll.u32 %s254_s4, 4  ;;  %s2048_s15 = smov 4   ;;  %s263_s25 = int_to_ptr.vmem [resolvable:$true] %s262_s25 }
  0x3c   : > { %1686 = dma.hbm_to_vmem [thread:$0]  (!%p2178_p7), %s261_s1, 2048, %s263_s25, %s2184_s8, %s2047_s20, %s2047_s20, %s2048_s15  }
  0x3d   : > { %274 = sbr.rel (%p2191_p10) target bundleno = 867 (0x363), region = 40  ;;  %s2271_s27 = sand.u32 (!%p2191_p10), 1, %s2018_s22  }
  0x3e   : > { %s1494_s10 = sshll.u32 (!%p2191_p10), %s2271_s27, 7  ;;  %s277_s3 = scalar_lea.sflag (!%p2191_p10), [#allocation4], %s2271_s27 }
  0x3f   : > { %s2275_s21 = scalar_lea.vmem (!%p2191_p10), [#allocation3], %s1494_s10 }
  0x42   : > { %1989 = dma.done.wait (%p2221_p8), %s277_s3, 2048  }
  0x43   : > { %1991 = vsyncadd (%p2221_p8), %s277_s3, 4294965248  ;;  %s286_s23 = sand.u32 1, %s2196_s14   ;;  %s288_s12 = sand.u32 1, %s2006_s19  }
  0x44   : > { %s1495_s6 = sshll.u32 %s288_s12, 7  ;;  %s287_s8 = scalar_lea.sflag [#allocation7], %s286_s23 }
  0x45   : > { %s2283_s11 = scalar_lea.vmem [#allocation6], %s1495_s6 }
  0x46   : > { %1993 = dma.done.wait (%p2228_p1), %s287_s8, 4096  }
  0x47   : > { %1995 = vsyncadd (%p2228_p1), %s287_s8, 4294963200  ;;  %s2289_s13 = scalar_lea.vmem [#allocation8], %s1495_s6  ;;  %s2291_s7 = scalar_lea.vmem [#allocation9], %s1494_s10 }
  0x48   : > { %p1498_p5 = scmp.ne.s32.totalorder %s2026_s24, 0 }
  0x4a   : > { %345 = sbr.rel (%p1498_p5) target bundleno = 96 (0x60), region = 56 }
  0x4f   : > { %v2049_v0 = vmov 0.0  }
  0x50   : > { %346 = vst [vmem:[#allocation2 + $0x30] sm:$0xff] %v2049_v0 }
  0x51   : > { %347 = vst [vmem:[#allocation2] sm:$0xff] %v2049_v0 }
  0x52   : > { %348 = vst [vmem:[#allocation2 + $0x58] sm:$0xff] %v2049_v0 }
  0x53   : > { %349 = vst [vmem:[#allocation2 + $0x18] sm:$0xff] %v2049_v0 }
  0x54   : > { %350 = vst [vmem:[#allocation2 + $0x50] sm:$0xff] %v2049_v0 }
  0x55   : > { %351 = vst [vmem:[#allocation2 + $0x68] sm:$0xff] %v2049_v0 }
  0x56   : > { %352 = vst [vmem:[#allocation2 + $0x8] sm:$0xff] %v2049_v0 }
  0x57   : > { %353 = vst [vmem:[#allocation2 + $0x48] sm:$0xff] %v2049_v0 }
  0x58   : > { %354 = vst [vmem:[#allocation2 + $0x40] sm:$0xff] %v2049_v0 }
  0x59   : > { %355 = vst [vmem:[#allocation2 + $0x20] sm:$0xff] %v2049_v0 }
  0x5a   : > { %356 = vst [vmem:[#allocation2 + $0x10] sm:$0xff] %v2049_v0 }
  0x5b   : > { %357 = vst [vmem:[#allocation2 + $0x38] sm:$0xff] %v2049_v0 }
  0x5c   : > { %358 = vst [vmem:[#allocation2 + $0x60] sm:$0xff] %v2049_v0 }
  0x5d   : > { %359 = vst [vmem:[#allocation2 + $0x70] sm:$0xff] %v2049_v0 }
  0x5e   : > { %360 = vst [vmem:[#allocation2 + $0x78] sm:$0xff] %v2049_v0 }
  0x5f   : > { %361 = vst [vmem:[#allocation2 + $0x28] sm:$0xff] %v2049_v0 }
  0x60 PF: > { %v1557_v1 = vld [vmem:[%s2283_s11 + $0x70] sm:$0xf]  ;;  %v1651_v2 = vld [vmem:[%s2283_s11 + $0x74] sm:$0xf0]  ;;  %v1650_v3 = vld [vmem:[%s2283_s11 + $0x74] sm:$0xf] }
  0x61   : > { %v1558_v4 = vor.u32 %v1651_v2, %v1557_v1  ;;  %v1559_v5 = vld [vmem:[%s2283_s11 + $0x78] sm:$0xf0]  ;;  %v1549_v6 = vld [vmem:[%s2283_s11 + $0x60] sm:$0xf]  ;;  %v1649_v7 = vld [vmem:[%s2283_s11 + $0x64] sm:$0xf0] }
  0x62   : > { %v1562_v8 = vor.u32 %v1650_v3, %v1559_v5  ;;  %v1648_v9 = vld [vmem:[%s2283_s11 + $0x64] sm:$0xf]  ;;  %v1551_v10 = vld [vmem:[%s2283_s11 + $0x68] sm:$0xf0]  ;;  %v1550_v11 = vor.u32 %v1649_v7, %v1549_v6  ;;  %v1541_v13 = vld [vmem:[%s2283_s11 + $0x50] sm:$0xf] }
  0x63   : > { %482 = vmatpush.bf16.msra.mxu0 %v1558_v4  ;;  %v1554_v12 = vor.u32 %v1648_v9, %v1551_v10  ;;  %v1647_v14 = vld [vmem:[%s2283_s11 + $0x54] sm:$0xf0]  ;;  %v1646_v15 = vld [vmem:[%s2283_s11 + $0x54] sm:$0xf]  ;;  %v1543_v16 = vld [vmem:[%s2283_s11 + $0x58] sm:$0xf0] }
  0x64   : > { %531 = vmatpush.bf16.msra.mxu1 %v1562_v8  ;;  %v1542_v17 = vor.u32 %v1647_v14, %v1541_v13  ;;  %v1546_v18 = vor.u32 %v1646_v15, %v1543_v16  ;;  %v1533_v19 = vld [vmem:[%s2283_s11 + $0x40] sm:$0xf]  ;;  %v1645_v20 = vld [vmem:[%s2283_s11 + $0x44] sm:$0xf0]  ;;  %v1644_v21 = vld [vmem:[%s2283_s11 + $0x44] sm:$0xf] }
  0x65   : > { %v1535_v22 = vld [vmem:[%s2283_s11 + $0x48] sm:$0xf0]  ;;  %v1534_v23 = vor.u32 %v1645_v20, %v1533_v19  ;;  %v1525_v25 = vld [vmem:[%s2283_s11 + $0x30] sm:$0xf]  ;;  %v1643_v26 = vld [vmem:[%s2283_s11 + $0x34] sm:$0xf0] }
  0x66   : > { %v1538_v24 = vor.u32 %v1644_v21, %v1535_v22  ;;  %v1642_v27 = vld [vmem:[%s2283_s11 + $0x34] sm:$0xf]  ;;  %v1527_v28 = vld [vmem:[%s2283_s11 + $0x38] sm:$0xf0]  ;;  %v1526_v29 = vor.u32 %v1643_v26, %v1525_v25  ;;  %v1517_v31 = vld [vmem:[%s2283_s11 + $0x20] sm:$0xf] }
  0x67   : > { %483 = vmatpush.bf16.msra.mxu0 %v1550_v11  ;;  %v1530_v30 = vor.u32 %v1642_v27, %v1527_v28  ;;  %v1641_v32 = vld [vmem:[%s2283_s11 + $0x24] sm:$0xf0]  ;;  %v1640_v33 = vld [vmem:[%s2283_s11 + $0x24] sm:$0xf]  ;;  %v1519_v34 = vld [vmem:[%s2283_s11 + $0x28] sm:$0xf0] }
  0x68   : > { %532 = vmatpush.bf16.msra.mxu1 %v1554_v12  ;;  %v1518_v35 = vor.u32 %v1641_v32, %v1517_v31  ;;  %v1522_v36 = vor.u32 %v1640_v33, %v1519_v34  ;;  %v1509_v37 = vld [vmem:[%s2283_s11 + $0x10] sm:$0xf]  ;;  %v1639_v38 = vld [vmem:[%s2283_s11 + $0x14] sm:$0xf0]  ;;  %v1638_v39 = vld [vmem:[%s2283_s11 + $0x14] sm:$0xf] }
  0x69   : > { %v1511_v40 = vld [vmem:[%s2283_s11 + $0x18] sm:$0xf0]  ;;  %v1510_v41 = vor.u32 %v1639_v38, %v1509_v37  ;;  %v1501_v43 = vld [vmem:[%s2283_s11] sm:$0xf]  ;;  %v1637_v44 = vld [vmem:[%s2283_s11 + $0x4] sm:$0xf0] }
  0x6a   : > { %v1514_v42 = vor.u32 %v1638_v39, %v1511_v40  ;;  %v1636_v45 = vld [vmem:[%s2283_s11 + $0x4] sm:$0xf]  ;;  %v1503_v46 = vld [vmem:[%s2283_s11 + $0x8] sm:$0xf0]  ;;  %v1502_v47 = vor.u32 %v1637_v44, %v1501_v43  ;;  %v364_v52 = vld [vmem:[%s2275_s21 + $0x10] sm:$0xff]  ;;  %p1627_p7 = scmp.ne.s32.totalorder %s2026_s24, 1 }
  0x6b   : > { %484 = vmatpush.bf16.msra.mxu0 %v1542_v17  ;;  %v362_v48 = vld [vmem:[%s2275_s21] sm:$0xff]  ;;  %v363_v49 = vld [vmem:[%s2275_s21 + $0x8] sm:$0xff]  ;;  %v1506_v50 = vor.u32 %v1636_v45, %v1503_v46  ;;  %v365_v53 = vld [vmem:[%s2275_s21 + $0x18] sm:$0xff]  ;;  %s2855_s5 = sld [smem:[#allocation25_spill]] (!%p1627_p7) }
  0x6c   : > { %533 = vmatpush.bf16.msra.mxu1 %v1546_v18  ;;  %v378_v51 = vpack.c.bf16 %v363_v49, %v362_v48  ;;  %v379_v54 = vpack.c.bf16 %v365_v53, %v364_v52  ;;  %v366_v55 = vld [vmem:[%s2275_s21 + $0x20] sm:$0xff]  ;;  %v367_v56 = vld [vmem:[%s2275_s21 + $0x28] sm:$0xff]  ;;  %v368_v58 = vld [vmem:[%s2275_s21 + $0x30] sm:$0xff]  ;;  %s2856_s18 = sld [smem:[#allocation26_spill]] (!%p1627_p7) }
  0x6d   : > { %v380_v57 = vpack.c.bf16 %v367_v56, %v366_v55  ;;  %v369_v59 = vld [vmem:[%s2275_s21 + $0x38] sm:$0xff]  ;;  %v370_v61 = vld [vmem:[%s2275_s21 + $0x40] sm:$0xff]  ;;  %v371_v62 = vld [vmem:[%s2275_s21 + $0x48] sm:$0xff] }
  0x6e   : > { %v381_v60 = vpack.c.bf16 %v369_v59, %v368_v58  ;;  %v382_v63 = vpack.c.bf16 %v371_v62, %v370_v61  ;;  %v1659_v0 = vld [vmem:[%s2289_s13 + $0x38] sm:$0xff]  ;;  %v1658_v2 = vld [vmem:[%s2289_s13 + $0x30] sm:$0xff]  ;;  %v1657_v7 = vld [vmem:[%s2289_s13 + $0x28] sm:$0xff] }
  0x6f   : > { %485 = vmatpush.bf16.msra.mxu0 %v1534_v23  ;;  %v1667_v1 = vld [vmem:[%s2289_s13 + $0x78] sm:$0xff]  ;;  %772 = vmatpush.bf16.msra.mxu2 %v1659_v0  ;;  %v1666_v3 = vld [vmem:[%s2289_s13 + $0x70] sm:$0xff]  ;;  %v1665_v8 = vld [vmem:[%s2289_s13 + $0x68] sm:$0xff] }
  0x70   : > { %534 = vmatpush.bf16.msra.mxu1 %v1538_v24  ;;  %821 = vmatpush.bf16.msra.mxu3 %v1667_v1  ;;  %v372_v4 = vld [vmem:[%s2275_s21 + $0x50] sm:$0xff]  ;;  %v373_v5 = vld [vmem:[%s2275_s21 + $0x58] sm:$0xff]  ;;  %v1656_v9 = vld [vmem:[%s2289_s13 + $0x20] sm:$0xff] }
  0x71   : > { %v383_v6 = vpack.c.bf16 %v373_v5, %v372_v4  ;;  %v1664_v10 = vld [vmem:[%s2289_s13 + $0x60] sm:$0xff]  ;;  %v1655_v11 = vld [vmem:[%s2289_s13 + $0x18] sm:$0xff]  ;;  %v375_v14 = vld [vmem:[%s2275_s21 + $0x68] sm:$0xff] }
  0x72   : > { %v1663_v12 = vld [vmem:[%s2289_s13 + $0x58] sm:$0xff]  ;;  %v374_v13 = vld [vmem:[%s2275_s21 + $0x60] sm:$0xff]  ;;  %v1654_v16 = vld [vmem:[%s2289_s13 + $0x10] sm:$0xff] }
  0x73   : > { %486 = vmatpush.bf16.msra.mxu0 %v1526_v29  ;;  %773 = vmatpush.bf16.msra.mxu2 %v1658_v2  ;;  %v384_v15 = vpack.c.bf16 %v375_v14, %v374_v13  ;;  %v1662_v17 = vld [vmem:[%s2289_s13 + $0x50] sm:$0xff]  ;;  %v1653_v18 = vld [vmem:[%s2289_s13 + $0x8] sm:$0xff]  ;;  %v1652_v20 = vld [vmem:[%s2289_s13] sm:$0xff] }
  0x74   : > { %535 = vmatpush.bf16.msra.mxu1 %v1530_v30  ;;  %822 = vmatpush.bf16.msra.mxu3 %v1666_v3  ;;  %v1661_v19 = vld [vmem:[%s2289_s13 + $0x48] sm:$0xff]  ;;  %v1660_v21 = vld [vmem:[%s2289_s13 + $0x40] sm:$0xff]  ;;  %v376_v22 = vld [vmem:[%s2275_s21 + $0x70] sm:$0xff] }
  0x75   : > { %v377_v23 = vld [vmem:[%s2275_s21 + $0x78] sm:$0xff] }
  0x76   : > { %v385_v24 = vpack.c.bf16 %v377_v23, %v376_v22 }
  0x77   : > { %487 = vmatpush.bf16.msra.mxu0 %v1518_v35  ;;  %774 = vmatpush.bf16.msra.mxu2 %v1657_v7 }
  0x78   : > { %536 = vmatpush.bf16.msra.mxu1 %v1522_v36  ;;  %823 = vmatpush.bf16.msra.mxu3 %v1665_v8 }
  0x7b   : > { %488 = vmatpush.bf16.msra.mxu0 %v1510_v41  ;;  %775 = vmatpush.bf16.msra.mxu2 %v1656_v9 }
  0x7c   : > { %537 = vmatpush.bf16.msra.mxu1 %v1514_v42  ;;  %824 = vmatpush.bf16.msra.mxu3 %v1664_v10 }
  0x7f   : > { %489 = vmatpush.bf16.msra.mxu0 %v1502_v47  ;;  %776 = vmatpush.bf16.msra.mxu2 %v1655_v11 }
  0x80   : > { %538 = vmatpush.bf16.msra.mxu1 %v1506_v50  ;;  %825 = vmatpush.bf16.msra.mxu3 %v1663_v12 }
  0x82   : > { %490 = vmatmul.bf16.vlgmr.msra.gmra.mxu0 %v378_v51 }
  0x83   : > { %539 = vmatmul.bf16.vlgmr.msra.gmra.mxu1 %v378_v51  ;;  %777 = vmatpush.bf16.msra.mxu2 %v1654_v16 }
  0x84   : > { %826 = vmatpush.bf16.msra.mxu3 %v1662_v17 }
  0x87   : > { %778 = vmatpush.bf16.msra.mxu2 %v1653_v18 }
  0x88   : > { %827 = vmatpush.bf16.msra.mxu3 %v1661_v19 }
  0x8b   : > { %779 = vmatpush.bf16.msra.mxu2 %v1652_v20 }
  0x8c   : > { %828 = vmatpush.bf16.msra.mxu3 %v1660_v21 }
  0x92   : > { %495 = vmatmul.bf16.gmra.mxu0 %v379_v54 }
  0x93   : > { %544 = vmatmul.bf16.gmra.mxu1 %v379_v54 }
  0xa2   : > { %500 = vmatmul.bf16.gmra.mxu0 %v380_v57 }
  0xa3   : > { %549 = vmatmul.bf16.gmra.mxu1 %v380_v57 }
  0xb2   : > { %505 = vmatmul.bf16.gmra.mxu0 %v381_v60 }
  0xb3   : > { %554 = vmatmul.bf16.gmra.mxu1 %v381_v60 }
  0xc2   : > { %510 = vmatmul.bf16.gmra.mxu0 %v382_v63 }
  0xc3   : > { %559 = vmatmul.bf16.gmra.mxu1 %v382_v63 }
  0xd2   : > { %515 = vmatmul.bf16.gmra.mxu0 %v383_v6 }
  0xd3   : > { %564 = vmatmul.bf16.gmra.mxu1 %v383_v6 }
  0xe2   : > { %520 = vmatmul.bf16.gmra.mxu0 %v384_v15 }
  0xe3   : > { %569 = vmatmul.bf16.gmra.mxu1 %v384_v15 }
  0xf2   : > { %525 = vmatmul.bf16.gmra.mxu0 %v385_v24 }
  0xf3   : > { %574 = vmatmul.bf16.gmra.mxu1 %v385_v24 }
  0xff   : > { %v491_v25 = vpop.f32.mrf.mxu0 }
 0x100   : > { %v540_v26 = vpop.f32.mrf.mxu1  ;;  %v580_v28 = vmax.f32 %v491_v25, 0.0 }
 0x101   : > { %v581_v31 = vmax.f32 %v540_v26, 0.0 }
 0x107   : > { %v493_v27 = vpop.f32.mrf.mxu0 }
 0x108   : > { %v582_v29 = vmax.f32 %v493_v27, 0.0  ;;  %v542_v30 = vpop.f32.mrf.mxu1 }
 0x109   : > { %v583_v32 = vmax.f32 %v542_v30, 0.0 }
 0x10a   : > { %v612_v33 = vpack.c.bf16 %v582_v29, %v580_v28 }
 0x10b   : > { %v613_v34 = vpack.c.bf16 %v583_v32, %v581_v31 }
 0x10c   : > { %780 = vmatmul.bf16.vlgmr.msra.gmra.mxu2 %v612_v33 }
 0x10d   : > { %829 = vmatmul.bf16.vlgmr.msra.gmra.mxu3 %v613_v34 }
 0x10f   : > { %v496_v35 = vpop.f32.mrf.mxu0 }
 0x110   : > { %v545_v36 = vpop.f32.mrf.mxu1  ;;  %v584_v38 = vmax.f32 %v496_v35, 0.0 }
 0x111   : > { %v585_v41 = vmax.f32 %v545_v36, 0.0 }
 0x117   : > { %v498_v37 = vpop.f32.mrf.mxu0 }
 0x118   : > { %v586_v39 = vmax.f32 %v498_v37, 0.0  ;;  %v547_v40 = vpop.f32.mrf.mxu1 }
 0x119   : > { %v587_v42 = vmax.f32 %v547_v40, 0.0 }
 0x11a   : > { %v614_v43 = vpack.c.bf16 %v586_v39, %v584_v38 }
 0x11b   : > { %v615_v44 = vpack.c.bf16 %v587_v42, %v585_v41  ;;  %v628_v42 = vld [vmem:[#allocation2 + $0x30] sm:$0xff] }
 0x11c   : > { %785 = vmatmul.bf16.gmra.mxu2 %v614_v43 }
 0x11d   : > { %834 = vmatmul.bf16.gmra.mxu3 %v615_v44 }
 0x11f   : > { %v501_v45 = vpop.f32.mrf.mxu0 }
 0x120   : > { %v550_v46 = vpop.f32.mrf.mxu1  ;;  %v588_v48 = vmax.f32 %v501_v45, 0.0 }
 0x121   : > { %v589_v51 = vmax.f32 %v550_v46, 0.0 }
 0x127   : > { %v503_v47 = vpop.f32.mrf.mxu0 }
 0x128   : > { %v590_v49 = vmax.f32 %v503_v47, 0.0  ;;  %v552_v50 = vpop.f32.mrf.mxu1  ;;  %v629_v47 = vld [vmem:[#allocation2] sm:$0xff] }
 0x129   : > { %v591_v52 = vmax.f32 %v552_v50, 0.0 }
 0x12a   : > { %v616_v53 = vpack.c.bf16 %v590_v49, %v588_v48 }
 0x12b   : > { %v617_v54 = vpack.c.bf16 %v591_v52, %v589_v51  ;;  %v630_v52 = vld [vmem:[#allocation2 + $0x58] sm:$0xff] }
 0x12c   : > { %790 = vmatmul.bf16.gmra.mxu2 %v616_v53 }
 0x12d   : > { %839 = vmatmul.bf16.gmra.mxu3 %v617_v54 }
 0x12f   : > { %v506_v55 = vpop.f32.mrf.mxu0 }
 0x130   : > { %v555_v56 = vpop.f32.mrf.mxu1  ;;  %v592_v58 = vmax.f32 %v506_v55, 0.0 }
 0x131   : > { %v593_v61 = vmax.f32 %v555_v56, 0.0 }
 0x137   : > { %v508_v57 = vpop.f32.mrf.mxu0 }
 0x138   : > { %v594_v59 = vmax.f32 %v508_v57, 0.0  ;;  %v557_v60 = vpop.f32.mrf.mxu1  ;;  %v631_v57 = vld [vmem:[#allocation2 + $0x18] sm:$0xff] }
 0x139   : > { %v595_v62 = vmax.f32 %v557_v60, 0.0 }
 0x13a   : > { %v618_v63 = vpack.c.bf16 %v594_v59, %v592_v58 }
 0x13b   : > { %v619_v0 = vpack.c.bf16 %v595_v62, %v593_v61  ;;  %v632_v62 = vld [vmem:[#allocation2 + $0x50] sm:$0xff] }
 0x13c   : > { %795 = vmatmul.bf16.gmra.mxu2 %v618_v63 }
 0x13d   : > { %844 = vmatmul.bf16.gmra.mxu3 %v619_v0 }
 0x13f   : > { %v511_v1 = vpop.f32.mrf.mxu0 }
 0x140   : > { %v560_v2 = vpop.f32.mrf.mxu1  ;;  %v596_v4 = vmax.f32 %v511_v1, 0.0 }
 0x141   : > { %v597_v7 = vmax.f32 %v560_v2, 0.0 }
 0x147   : > { %v513_v3 = vpop.f32.mrf.mxu0 }
 0x148   : > { %v598_v5 = vmax.f32 %v513_v3, 0.0  ;;  %v562_v6 = vpop.f32.mrf.mxu1  ;;  %v633_v3 = vld [vmem:[#allocation2 + $0x68] sm:$0xff] }
 0x149   : > { %v599_v8 = vmax.f32 %v562_v6, 0.0 }
 0x14a   : > { %v620_v9 = vpack.c.bf16 %v598_v5, %v596_v4 }
 0x14b   : > { %v621_v10 = vpack.c.bf16 %v599_v8, %v597_v7  ;;  %v634_v8 = vld [vmem:[#allocation2 + $0x8] sm:$0xff] }
 0x14c   : > { %800 = vmatmul.bf16.gmra.mxu2 %v620_v9 }
 0x14d   : > { %849 = vmatmul.bf16.gmra.mxu3 %v621_v10 }
 0x14f   : > { %v516_v11 = vpop.f32.mrf.mxu0 }
 0x150   : > { %v565_v12 = vpop.f32.mrf.mxu1  ;;  %v600_v14 = vmax.f32 %v516_v11, 0.0 }
 0x151   : > { %v601_v17 = vmax.f32 %v565_v12, 0.0 }
 0x157   : > { %v518_v13 = vpop.f32.mrf.mxu0 }
 0x158   : > { %v602_v15 = vmax.f32 %v518_v13, 0.0  ;;  %v567_v16 = vpop.f32.mrf.mxu1  ;;  %v635_v13 = vld [vmem:[#allocation2 + $0x48] sm:$0xff] }
 0x159   : > { %v603_v18 = vmax.f32 %v567_v16, 0.0 }
 0x15a   : > { %v622_v19 = vpack.c.bf16 %v602_v15, %v600_v14 }
 0x15b   : > { %v623_v20 = vpack.c.bf16 %v603_v18, %v601_v17  ;;  %v636_v18 = vld [vmem:[#allocation2 + $0x40] sm:$0xff] }
 0x15c   : > { %805 = vmatmul.bf16.gmra.mxu2 %v622_v19 }
 0x15d   : > { %854 = vmatmul.bf16.gmra.mxu3 %v623_v20 }
 0x15f   : > { %v521_v21 = vpop.f32.mrf.mxu0 }
 0x160   : > { %v570_v22 = vpop.f32.mrf.mxu1  ;;  %v604_v24 = vmax.f32 %v521_v21, 0.0 }
 0x161   : > { %v605_v27 = vmax.f32 %v570_v22, 0.0 }
 0x167   : > { %v523_v23 = vpop.f32.mrf.mxu0 }
 0x168   : > { %v606_v25 = vmax.f32 %v523_v23, 0.0  ;;  %v572_v26 = vpop.f32.mrf.mxu1  ;;  %v637_v23 = vld [vmem:[#allocation2 + $0x20] sm:$0xff] }
 0x169   : > { %v607_v28 = vmax.f32 %v572_v26, 0.0 }
 0x16a   : > { %v624_v29 = vpack.c.bf16 %v606_v25, %v604_v24 }
 0x16b   : > { %v625_v30 = vpack.c.bf16 %v607_v28, %v605_v27  ;;  %v638_v28 = vld [vmem:[#allocation2 + $0x10] sm:$0xff] }
 0x16c   : > { %810 = vmatmul.bf16.gmra.mxu2 %v624_v29 }
 0x16d   : > { %859 = vmatmul.bf16.gmra.mxu3 %v625_v30 }
 0x16f   : > { %v526_v31 = vpop.f32.mrf.mxu0 }
 0x170   : > { %v575_v32 = vpop.f32.mrf.mxu1  ;;  %v608_v34 = vmax.f32 %v526_v31, 0.0 }
 0x171   : > { %v609_v37 = vmax.f32 %v575_v32, 0.0 }
 0x177   : > { %v528_v33 = vpop.f32.mrf.mxu0 }
 0x178   : > { %v610_v35 = vmax.f32 %v528_v33, 0.0  ;;  %v577_v36 = vpop.f32.mrf.mxu1  ;;  %v639_v33 = vld [vmem:[#allocation2 + $0x38] sm:$0xff] }
 0x179   : > { %v611_v38 = vmax.f32 %v577_v36, 0.0 }
 0x17a   : > { %v626_v39 = vpack.c.bf16 %v610_v35, %v608_v34 }
 0x17b   : > { %v627_v40 = vpack.c.bf16 %v611_v38, %v609_v37  ;;  %v640_v38 = vld [vmem:[#allocation2 + $0x60] sm:$0xff] }
 0x17c   : > { %815 = vmatmul.bf16.gmra.mxu2 %v626_v39 }
 0x17d   : > { %864 = vmatmul.bf16.gmra.mxu3 %v627_v40 }
 0x18f   : > { %v781_v41 = vpop.f32.mrf.mxu2 }
 0x190   : > { %v830_v43 = vpop.f32.mrf.mxu3 }
 0x191   : > { %v831_v44 = vadd.f32 %v830_v43, %v781_v41  ;;  %v641_v43 = vld [vmem:[#allocation2 + $0x70] sm:$0xff] }
 0x193   : > { %v870_v45 = vadd.f32 %v831_v44, %v628_v42 }
 0x195   : > { %886 = vst [vmem:[#allocation2 + $0x30] sm:$0xff] %v870_v45 }
 0x197   : > { %v783_v46 = vpop.f32.mrf.mxu2 }
 0x198   : > { %v832_v48 = vpop.f32.mrf.mxu3 }
 0x199   : > { %v833_v49 = vadd.f32 %v832_v48, %v783_v46  ;;  %v642_v48 = vld [vmem:[#allocation2 + $0x78] sm:$0xff] }
 0x19b   : > { %v871_v50 = vadd.f32 %v833_v49, %v629_v47 }
 0x19d   : > { %887 = vst [vmem:[#allocation2] sm:$0xff] %v871_v50 }
 0x19f   : > { %v786_v51 = vpop.f32.mrf.mxu2 }
 0x1a0   : > { %v835_v53 = vpop.f32.mrf.mxu3 }
 0x1a1   : > { %v836_v54 = vadd.f32 %v835_v53, %v786_v51  ;;  %v643_v53 = vld [vmem:[#allocation2 + $0x28] sm:$0xff] }
 0x1a3   : > { %v872_v55 = vadd.f32 %v836_v54, %v630_v52 }
 0x1a5   : > { %888 = vst [vmem:[#allocation2 + $0x58] sm:$0xff] %v872_v55 }
 0x1a7   : > { %v788_v56 = vpop.f32.mrf.mxu2 }
 0x1a8   : > { %v837_v58 = vpop.f32.mrf.mxu3 }
 0x1a9   : > { %v838_v59 = vadd.f32 %v837_v58, %v788_v56 }
 0x1ab   : > { %v873_v60 = vadd.f32 %v838_v59, %v631_v57 }
 0x1ad   : > { %889 = vst [vmem:[#allocation2 + $0x18] sm:$0xff] %v873_v60 }
 0x1af   : > { %v791_v61 = vpop.f32.mrf.mxu2 }
 0x1b0   : > { %v840_v63 = vpop.f32.mrf.mxu3 }
 0x1b1   : > { %v841_v0 = vadd.f32 %v840_v63, %v791_v61 }
 0x1b3   : > { %v874_v1 = vadd.f32 %v841_v0, %v632_v62 }
 0x1b5   : > { %890 = vst [vmem:[#allocation2 + $0x50] sm:$0xff] %v874_v1 }
 0x1b7   : > { %v793_v2 = vpop.f32.mrf.mxu2 }
 0x1b8   : > { %v842_v4 = vpop.f32.mrf.mxu3 }
 0x1b9   : > { %v843_v5 = vadd.f32 %v842_v4, %v793_v2 }
 0x1bb   : > { %v875_v6 = vadd.f32 %v843_v5, %v633_v3 }
 0x1bd   : > { %891 = vst [vmem:[#allocation2 + $0x68] sm:$0xff] %v875_v6 }
 0x1bf   : > { %v796_v7 = vpop.f32.mrf.mxu2 }
 0x1c0   : > { %v845_v9 = vpop.f32.mrf.mxu3 }
 0x1c1   : > { %v846_v10 = vadd.f32 %v845_v9, %v796_v7 }
 0x1c3   : > { %v876_v11 = vadd.f32 %v846_v10, %v634_v8 }
 0x1c5   : > { %892 = vst [vmem:[#allocation2 + $0x8] sm:$0xff] %v876_v11 }
 0x1c7   : > { %v798_v12 = vpop.f32.mrf.mxu2 }
 0x1c8   : > { %v847_v14 = vpop.f32.mrf.mxu3 }
 0x1c9   : > { %v848_v15 = vadd.f32 %v847_v14, %v798_v12 }
 0x1cb   : > { %v877_v16 = vadd.f32 %v848_v15, %v635_v13 }
 0x1cd   : > { %893 = vst [vmem:[#allocation2 + $0x48] sm:$0xff] %v877_v16 }
 0x1cf   : > { %v801_v17 = vpop.f32.mrf.mxu2 }
 0x1d0   : > { %v850_v19 = vpop.f32.mrf.mxu3 }
 0x1d1   : > { %v851_v20 = vadd.f32 %v850_v19, %v801_v17 }
 0x1d3   : > { %v878_v21 = vadd.f32 %v851_v20, %v636_v18 }
 0x1d5   : > { %894 = vst [vmem:[#allocation2 + $0x40] sm:$0xff] %v878_v21 }
 0x1d7   : > { %v803_v22 = vpop.f32.mrf.mxu2 }
 0x1d8   : > { %v852_v24 = vpop.f32.mrf.mxu3 }
 0x1d9   : > { %v853_v25 = vadd.f32 %v852_v24, %v803_v22 }
 0x1db   : > { %v879_v26 = vadd.f32 %v853_v25, %v637_v23 }
 0x1dd   : > { %895 = vst [vmem:[#allocation2 + $0x20] sm:$0xff] %v879_v26 }
 0x1df   : > { %v806_v27 = vpop.f32.mrf.mxu2 }
 0x1e0   : > { %v855_v29 = vpop.f32.mrf.mxu3 }
 0x1e1   : > { %v856_v30 = vadd.f32 %v855_v29, %v806_v27 }
 0x1e3   : > { %v880_v31 = vadd.f32 %v856_v30, %v638_v28 }
 0x1e5   : > { %896 = vst [vmem:[#allocation2 + $0x10] sm:$0xff] %v880_v31 }
 0x1e7   : > { %v808_v32 = vpop.f32.mrf.mxu2 }
 0x1e8   : > { %v857_v34 = vpop.f32.mrf.mxu3 }
 0x1e9   : > { %v858_v35 = vadd.f32 %v857_v34, %v808_v32 }
 0x1eb   : > { %v881_v36 = vadd.f32 %v858_v35, %v639_v33 }
 0x1ed   : > { %897 = vst [vmem:[#allocation2 + $0x38] sm:$0xff] %v881_v36 }
 0x1ef   : > { %v811_v37 = vpop.f32.mrf.mxu2 }
 0x1f0   : > { %v860_v39 = vpop.f32.mrf.mxu3 }
 0x1f1   : > { %v861_v40 = vadd.f32 %v860_v39, %v811_v37 }
 0x1f3   : > { %v882_v41 = vadd.f32 %v861_v40, %v640_v38 }
 0x1f5   : > { %898 = vst [vmem:[#allocation2 + $0x60] sm:$0xff] %v882_v41 }
 0x1f7   : > { %v813_v42 = vpop.f32.mrf.mxu2 }
 0x1f8   : > { %v862_v44 = vpop.f32.mrf.mxu3 }
 0x1f9   : > { %v863_v45 = vadd.f32 %v862_v44, %v813_v42 }
 0x1fb   : > { %v883_v46 = vadd.f32 %v863_v45, %v641_v43 }
 0x1fd   : > { %899 = vst [vmem:[#allocation2 + $0x70] sm:$0xff] %v883_v46 }
 0x1ff   : > { %v816_v47 = vpop.f32.mrf.mxu2 }
 0x200   : > { %v865_v49 = vpop.f32.mrf.mxu3 }
 0x201   : > { %v866_v50 = vadd.f32 %v865_v49, %v816_v47 }
 0x203   : > { %v884_v51 = vadd.f32 %v866_v50, %v642_v48 }
 0x205   : > { %900 = vst [vmem:[#allocation2 + $0x78] sm:$0xff] %v884_v51 }
 0x207   : > { %v818_v52 = vpop.f32.mrf.mxu2 }
 0x208   : > { %v867_v54 = vpop.f32.mrf.mxu3 }
 0x209   : > { %v868_v55 = vadd.f32 %v867_v54, %v818_v52  ;;  %905 = sbr.rel (%p1627_p7) target bundleno = 845 (0x34d), region = 60 }
 0x20b   : > { %v885_v56 = vadd.f32 %v868_v55, %v643_v53 }
 0x20d   : > { %901 = vst [vmem:[#allocation2 + $0x28] sm:$0xff] %v885_v56 }
 0x20e   : > { %v910_v57 = vld [vmem:[#allocation2 + $0x50] sm:$0xff]  ;;  %v926_v58 = vld [vmem:[%s2275_s21 + $0x20] sm:$0xff]  ;;  %v908_v59 = vld [vmem:[#allocation2 + $0x58] sm:$0xff]  ;;  %v2050_v41 = vmov 128.0  }
 0x20f   : > { %v2360_v60 = vadd.f32 %v926_v58, %v910_v57  ;;  %v924_v61 = vld [vmem:[%s2275_s21 + $0x10] sm:$0xff]  ;;  %v922_v63 = vld [vmem:[%s2275_s21] sm:$0xff]  ;;  %v911_v2 = vld [vmem:[#allocation2 + $0x68] sm:$0xff]  ;;  %1792 = vrcp.f32 %v2050_v41 }
 0x210   : > { %v906_v62 = vld [vmem:[#allocation2 + $0x30] sm:$0xff]  ;;  %v2364_v0 = vadd.f32 %v924_v61, %v908_v59  ;;  %v927_v3 = vld [vmem:[%s2275_s21 + $0x28] sm:$0xff]  ;;  %v909_v4 = vld [vmem:[#allocation2 + $0x18] sm:$0xff] }
 0x211   : > { %v2366_v1 = vadd.f32 %v922_v63, %v906_v62  ;;  %962 = vadd.xlane.f32.xlu2 %v2360_v60  ;;  %v925_v5 = vld [vmem:[%s2275_s21 + $0x18] sm:$0xff]  ;;  %v907_v6 = vld [vmem:[#allocation2] sm:$0xff]  ;;  %v923_v7 = vld [vmem:[%s2275_s21 + $0x8] sm:$0xff]  ;;  %v2374_v8 = vadd.f32 %v927_v3, %v911_v2 }
 0x212   : > { %958 = vadd.xlane.f32.xlu1 %v2364_v0  ;;  %v2376_v9 = vadd.f32 %v925_v5, %v909_v4  ;;  %v2378_v10 = vadd.f32 %v923_v7, %v907_v6  ;;  %v914_v11 = vld [vmem:[#allocation2 + $0x40] sm:$0xff]  ;;  %v912_v13 = vld [vmem:[#allocation2 + $0x8] sm:$0xff]  ;;  %v928_v14 = vld [vmem:[%s2275_s21 + $0x30] sm:$0xff] }
 0x213   : > { %954 = vadd.xlane.f32.xlu0 %v2366_v1  ;;  %v930_v12 = vld [vmem:[%s2275_s21 + $0x40] sm:$0xff]  ;;  %v913_v15 = vld [vmem:[#allocation2 + $0x48] sm:$0xff]  ;;  %v929_v16 = vld [vmem:[%s2275_s21 + $0x38] sm:$0xff]  ;;  %v2388_v18 = vadd.f32 %v928_v14, %v912_v13 }
 0x214   : > { %v2386_v17 = vadd.f32 %v930_v12, %v914_v11  ;;  %v2390_v19 = vadd.f32 %v929_v16, %v913_v15  ;;  %v917_v20 = vld [vmem:[#allocation2 + $0x38] sm:$0xff]  ;;  %v915_v22 = vld [vmem:[#allocation2 + $0x20] sm:$0xff]  ;;  %v931_v23 = vld [vmem:[%s2275_s21 + $0x48] sm:$0xff] }
 0x215   : > { %v933_v21 = vld [vmem:[%s2275_s21 + $0x58] sm:$0xff]  ;;  %v916_v24 = vld [vmem:[#allocation2 + $0x10] sm:$0xff]  ;;  %v2400_v27 = vadd.f32 %v931_v23, %v915_v22  ;;  %v918_v31 = vld [vmem:[#allocation2 + $0x60] sm:$0xff]  ;;  %v1793_v42 = vpop.eup %1792 }
 0x216   : > { %v932_v25 = vld [vmem:[%s2275_s21 + $0x50] sm:$0xff]  ;;  %v2398_v26 = vadd.f32 %v933_v21, %v917_v20  ;;  %v920_v29 = vld [vmem:[#allocation2 + $0x78] sm:$0xff]  ;;  %v934_v32 = vld [vmem:[%s2275_s21 + $0x60] sm:$0xff]  ;;  %v987_v43 = vmul.f32 128.0, %v1793_v42  ;;  %vm991_vm0 = vweird.f32 %v1793_v42 }
 0x217   : > { %v2402_v28 = vadd.f32 %v932_v25, %v916_v24  ;;  %v936_v30 = vld [vmem:[%s2275_s21 + $0x70] sm:$0xff]  ;;  %v935_v34 = vld [vmem:[%s2275_s21 + $0x68] sm:$0xff]  ;;  %v2412_v36 = vadd.f32 %v934_v32, %v918_v31  ;;  %v937_v39 = vld [vmem:[%s2275_s21 + $0x78] sm:$0xff] }
 0x218   : > { %v919_v33 = vld [vmem:[#allocation2 + $0x70] sm:$0xff]  ;;  %v2410_v35 = vadd.f32 %v936_v30, %v920_v29  ;;  %v921_v38 = vld [vmem:[#allocation2 + $0x28] sm:$0xff]  ;;  %v988_v44 = vsub.f32 1.0, %v987_v43 }
 0x219   : > { %964 = vadd.xlane.f32.xlu2 %v2374_v8  ;;  %v2414_v37 = vadd.f32 %v935_v34, %v919_v33  ;;  %v2420_v40 = vadd.f32 %v937_v39, %v921_v38 }
 0x21a   : > { %960 = vadd.xlane.f32.xlu1 %v2376_v9  ;;  %v989_v45 = vmul.f32 %v1793_v42, %v988_v44 }
 0x21b   : > { %956 = vadd.xlane.f32.xlu0 %v2378_v10 }
 0x21c   : > { %v990_v46 = vadd.f32 %v1793_v42, %v989_v45 }
 0x21e   : > { %v2423_v47 = vsel %vm991_vm0, %v1793_v42, %v990_v46 }
 0x221   : > { %970 = vadd.xlane.f32.xlu2 %v2386_v17 }
 0x222   : > { %968 = vadd.xlane.f32.xlu1 %v2390_v19 }
 0x223   : > { %966 = vadd.xlane.f32.xlu0 %v2388_v18 }
 0x229   : > { %976 = vadd.xlane.f32.xlu2 %v2398_v26 }
 0x22a   : > { %974 = vadd.xlane.f32.xlu1 %v2402_v28 }
 0x22b   : > { %972 = vadd.xlane.f32.xlu0 %v2400_v27 }
 0x231   : > { %982 = vadd.xlane.f32.xlu2 %v2410_v35 }
 0x232   : > { %980 = vadd.xlane.f32.xlu1 %v2414_v37 }
 0x233   : > { %978 = vadd.xlane.f32.xlu0 %v2412_v36 }
 0x23b   : > { %984 = vadd.xlane.f32.xlu0 %v2420_v40 }
 0x284   : > { %v963_v48 = vpop.xlane.xlu2 %962 }
 0x285   : > { %v959_v49 = vpop.xlane.xlu1 %958  ;;  %v997_v6 = vmul.f32 %v2423_v47, %v963_v48 }
 0x286   : > { %v955_v50 = vpop.xlane.xlu0 %954  ;;  %v995_v51 = vmul.f32 %v2423_v47, %v959_v49 }
 0x287   : > { %v993_v52 = vmul.f32 %v2423_v47, %v955_v50  ;;  %v2459_v12 = vsub.f32 %v2360_v60, %v997_v6 }
 0x288   : > { %v2428_v53 = vsub.f32 %v2364_v0, %v995_v51 }
 0x289   : > { %v2431_v54 = vsub.f32 %v2366_v1, %v993_v52  ;;  %v1029_v21 = vmul.f32 %v2459_v12, %v2459_v12 }
 0x28a   : > { %v1027_v55 = vmul.f32 %v2428_v53, %v2428_v53 }
 0x28b   : > { %v1025_v56 = vmul.f32 %v2431_v54, %v2431_v54 }
 0x28c   : > { %1045 = vadd.xlane.f32.xlu0 %v1027_v55  ;;  %v965_v57 = vpop.xlane.xlu2 %964 }
 0x28d   : > { %1041 = vadd.xlane.f32.xlu1 %v1025_v56  ;;  %v998_v58 = vmul.f32 %v2423_v47, %v965_v57  ;;  %v961_v59 = vpop.xlane.xlu1 %960 }
 0x28e   : > { %v957_v61 = vpop.xlane.xlu0 %956  ;;  %v996_v62 = vmul.f32 %v2423_v47, %v961_v59 }
 0x28f   : > { %v994_v63 = vmul.f32 %v2423_v47, %v957_v61  ;;  %v2441_v0 = vsub.f32 %v2374_v8, %v998_v58 }
 0x290   : > { %v2444_v1 = vsub.f32 %v2376_v9, %v996_v62 }
 0x291   : > { %v2447_v2 = vsub.f32 %v2378_v10, %v994_v63  ;;  %v1030_v3 = vmul.f32 %v2441_v0, %v2441_v0 }
 0x292   : > { %v1028_v4 = vmul.f32 %v2444_v1, %v2444_v1 }
 0x293   : > { %v1026_v5 = vmul.f32 %v2447_v2, %v2447_v2 }
 0x294   : > { %1051 = vadd.xlane.f32.xlu0 %v1030_v3  ;;  %v971_v7 = vpop.xlane.xlu2 %970 }
 0x295   : > { %1047 = vadd.xlane.f32.xlu1 %v1028_v4  ;;  %1043 = vadd.xlane.f32.xlu2 %v1026_v5  ;;  %v1001_v8 = vmul.f32 %v2423_v47, %v971_v7  ;;  %v969_v10 = vpop.xlane.xlu1 %968 }
 0x296   : > { %v967_v9 = vpop.xlane.xlu0 %966  ;;  %v1000_v16 = vmul.f32 %v2423_v47, %v969_v10 }
 0x297   : > { %v999_v11 = vmul.f32 %v2423_v47, %v967_v9  ;;  %v2462_v13 = vsub.f32 %v2386_v17, %v1001_v8 }
 0x299   : > { %v2465_v14 = vsub.f32 %v2388_v18, %v999_v11  ;;  %v1033_v15 = vmul.f32 %v2462_v13, %v2462_v13  ;;  %v2476_v18 = vsub.f32 %v2390_v19, %v1000_v16 }
 0x29b   : > { %v1031_v20 = vmul.f32 %v2465_v14, %v2465_v14  ;;  %v1032_v31 = vmul.f32 %v2476_v18, %v2476_v18 }
 0x29c   : > { %1057 = vadd.xlane.f32.xlu0 %v1033_v15  ;;  %v977_v60 = vpop.xlane.xlu2 %976 }
 0x29d   : > { %1053 = vadd.xlane.f32.xlu1 %v1031_v20  ;;  %1049 = vadd.xlane.f32.xlu2 %v1029_v21  ;;  %v1004_v17 = vmul.f32 %v2423_v47, %v977_v60  ;;  %v975_v23 = vpop.xlane.xlu1 %974 }
 0x29e   : > { %v973_v22 = vpop.xlane.xlu0 %972  ;;  %v1003_v32 = vmul.f32 %v2423_v47, %v975_v23 }
 0x29f   : > { %v1002_v24 = vmul.f32 %v2423_v47, %v973_v22  ;;  %v2480_v25 = vsub.f32 %v2398_v26, %v1004_v17 }
 0x2a1   : > { %v2483_v29 = vsub.f32 %v2400_v27, %v1002_v24  ;;  %v1036_v30 = vmul.f32 %v2480_v25, %v2480_v25  ;;  %v2494_v27 = vsub.f32 %v2402_v28, %v1003_v32 }
 0x2a3   : > { %v1034_v19 = vmul.f32 %v2483_v29, %v2483_v29  ;;  %v1035_v44 = vmul.f32 %v2494_v27, %v2494_v27 }
 0x2a4   : > { %1063 = vadd.xlane.f32.xlu0 %v1036_v30  ;;  %v983_v33 = vpop.xlane.xlu2 %982 }
 0x2a5   : > { %1059 = vadd.xlane.f32.xlu1 %v1034_v19  ;;  %1055 = vadd.xlane.f32.xlu2 %v1032_v31  ;;  %v1007_v26 = vmul.f32 %v2423_v47, %v983_v33  ;;  %v981_v39 = vpop.xlane.xlu1 %980 }
 0x2a6   : > { %v979_v34 = vpop.xlane.xlu0 %978  ;;  %v1006_v45 = vmul.f32 %v2423_v47, %v981_v39  ;;  %v2554_v39 = vld [vmem:[%s2855_s5] ss:$0 sm:$0xff] }
 0x2a7   : > { %v1005_v38 = vmul.f32 %v2423_v47, %v979_v34  ;;  %v2498_v41 = vsub.f32 %v2410_v35, %v1007_v26 }
 0x2a8   : > { %v2511_v35 = vsub.f32 %v2414_v37, %v1006_v45 }
 0x2a9   : > { %v2501_v42 = vsub.f32 %v2412_v36, %v1005_v38  ;;  %v1039_v43 = vmul.f32 %v2498_v41, %v2498_v41 }
 0x2aa   : > { %v1038_v49 = vmul.f32 %v2511_v35, %v2511_v35 }
 0x2ab   : > { %v1037_v28 = vmul.f32 %v2501_v42, %v2501_v42 }
 0x2ac   : > { %1069 = vadd.xlane.f32.xlu0 %v1039_v43 }
 0x2ad   : > { %1065 = vadd.xlane.f32.xlu1 %v1037_v28  ;;  %1061 = vadd.xlane.f32.xlu2 %v1035_v44 }
 0x2ae   : > { %v985_v46 = vpop.xlane.xlu0 %984 }
 0x2af   : > { %v1008_v36 = vmul.f32 %v2423_v47, %v985_v46 }
 0x2b1   : > { %v2515_v48 = vsub.f32 %v2420_v40, %v1008_v36 }
 0x2b3   : > { %v1040_v50 = vmul.f32 %v2515_v48, %v2515_v48 }
 0x2b5   : > { %1071 = vadd.xlane.f32.xlu1 %v1040_v50  ;;  %1067 = vadd.xlane.f32.xlu2 %v1038_v49  ;;  %v2571_v49 = vld [vmem:[%s2856_s18] ss:$0 sm:$0xff] }
 0x2ff   : > { %v1046_v52 = vpop.xlane.xlu0 %1045 }
 0x300   : > { %v1042_v51 = vpop.xlane.xlu1 %1041  ;;  %v1075_v37 = vmul.f32 %v1046_v52, %v2423_v47 }
 0x301   : > { %v1073_v55 = vmul.f32 %v1042_v51, %v2423_v47 }
 0x302   : > { %v1091_v57 = vadd.f32 1e-05, %v1075_v37 }
 0x303   : > { %v1089_v56 = vadd.f32 1e-05, %v1073_v55 }
 0x304   : > { %vm1131_vm3 = vweird.f32 %v1091_v57 }
 0x305   : > { %1794 = vrsqrt.f32 %v1089_v56  ;;  %vm1111_vm1 = vweird.f32 %v1089_v56 }
 0x306   : > { %1796 = vrsqrt.f32 %v1091_v57 }
 0x307   : > { %v1052_v58 = vpop.xlane.xlu0 %1051 }
 0x308   : > { %v1048_v40 = vpop.xlane.xlu1 %1047  ;;  %v1044_v61 = vpop.xlane.xlu2 %1043  ;;  %v1078_v62 = vmul.f32 %v1052_v58, %v2423_v47 }
 0x309   : > { %v1076_v59 = vmul.f32 %v1048_v40, %v2423_v47  ;;  %v1074_v63 = vmul.f32 %v1044_v61, %v2423_v47 }
 0x30a   : > { %v2528_v5 = vadd.f32 1e-05, %v1078_v62 }
 0x30b   : > { %v1795_v3 = vpop.eup %1794  ;;  %v2526_v4 = vadd.f32 1e-05, %v1076_v59  ;;  %v2530_v8 = vadd.f32 1e-05, %v1074_v63 }
 0x30c   : > { %v1797_v6 = vpop.eup %1796  ;;  %v1106_v7 = vmul.f32 %v1795_v3, %v1089_v56  ;;  %vm1112_vm2 = vweird.f32 %v1795_v3  ;;  %vm1161_vm8 = vweird.f32 %v2528_v5 }
 0x30d   : > { %v1126_v9 = vmul.f32 %v1797_v6, %v1091_v57  ;;  %1798 = vrsqrt.f32 %v2526_v4  ;;  %vm1132_vm4 = vweird.f32 %v1797_v6  ;;  %vm1141_vm5 = vweird.f32 %v2526_v4  ;;  %vm1113_vm6 = vmor %vm1111_vm1, %vm1112_vm2 }
 0x30e   : > { %v1107_v10 = vmul.f32 %v1795_v3, %v1106_v7  ;;  %1800 = vrsqrt.f32 %v2530_v8  ;;  %vm1133_vm7 = vmor %vm1131_vm3, %vm1132_vm4  ;;  %vm1121_vm13 = vweird.f32 %v2530_v8 }
 0x30f   : > { %v1127_v11 = vmul.f32 %v1797_v6, %v1126_v9  ;;  %1802 = vrsqrt.f32 %v2528_v5  ;;  %v1058_v20 = vpop.xlane.xlu0 %1057 }
 0x310   : > { %v1108_v15 = vmul.f32 0.5, %v1107_v10  ;;  %v1054_v16 = vpop.xlane.xlu1 %1053  ;;  %v1050_v60 = vpop.xlane.xlu2 %1049  ;;  %v1081_v22 = vmul.f32 %v1058_v20, %v2423_v47 }
 0x311   : > { %v1128_v21 = vmul.f32 0.5, %v1127_v11  ;;  %v1079_v17 = vmul.f32 %v1054_v16, %v2423_v47  ;;  %v1077_v24 = vmul.f32 %v1050_v60, %v2423_v47 }
 0x312   : > { %v1109_v23 = vsub.f32 1.5, %v1108_v15  ;;  %v2560_v45 = vadd.f32 1e-05, %v1081_v22 }
 0x313   : > { %v2538_v30 = vpop.eup %1798  ;;  %v1129_v31 = vsub.f32 1.5, %v1128_v21  ;;  %v2540_v32 = vadd.f32 1e-05, %v1079_v17  ;;  %v2547_v34 = vadd.f32 1e-05, %v1077_v24 }
 0x314   : > { %v2542_v19 = vpop.eup %1800  ;;  %v1110_v33 = vmul.f32 %v1795_v3, %v1109_v23  ;;  %v1136_v26 = vmul.f32 %v2538_v30, %v2526_v4  ;;  %vm1142_vm9 = vweird.f32 %v2538_v30  ;;  %vm1191_vm2 = vweird.f32 %v2560_v45 }
 0x315   : > { %v2549_v38 = vpop.eup %1802  ;;  %v1130_v43 = vmul.f32 %v1797_v6, %v1129_v31  ;;  %v1116_v44 = vmul.f32 %v2542_v19, %v2530_v8  ;;  %1804 = vrsqrt.f32 %v2540_v32  ;;  %vm1122_vm10 = vweird.f32 %v2542_v19  ;;  %vm1143_vm12 = vmor %vm1141_vm5, %vm1142_vm9 }
 0x316   : > { %v1114_v28 = vsel %vm1113_vm6, %v1795_v3, %v1110_v33  ;;  %v1137_v46 = vmul.f32 %v2538_v30, %v1136_v26  ;;  %v1156_v36 = vmul.f32 %v2549_v38, %v2528_v5  ;;  %1806 = vrsqrt.f32 %v2547_v34  ;;  %vm1123_vm15 = vmor %vm1121_vm13, %vm1122_vm10 }
 0x317   : > { %v1265_v50 = vmul.f32 %v1114_v28, %v2431_v54  ;;  %v1134_v51 = vsel %vm1133_vm7, %v1797_v6, %v1130_v43  ;;  %v1117_v52 = vmul.f32 %v2542_v19, %v1116_v44  ;;  %1808 = vrsqrt.f32 %v2560_v45  ;;  %v1064_v43 = vpop.xlane.xlu0 %1063 }
 0x318   : > { %v1267_v55 = vmul.f32 %v1134_v51, %v2428_v53  ;;  %v1138_v37 = vmul.f32 0.5, %v1137_v46  ;;  %v1157_v56 = vmul.f32 %v2549_v38, %v1156_v36  ;;  %v1060_v57 = vpop.xlane.xlu1 %1059  ;;  %v1056_v54 = vpop.xlane.xlu2 %1055  ;;  %vm1162_vm11 = vweird.f32 %v2549_v38 }
 0x319   : > { %v1285_v40 = vmul.f32 %v2554_v39, %v1265_v50  ;;  %v1118_v58 = vmul.f32 0.5, %v1117_v52  ;;  %v1080_v6 = vmul.f32 %v1056_v54, %v2423_v47  ;;  %v1082_v7 = vmul.f32 %v1060_v57, %v2423_v47  ;;  %vm1163_vm1 = vmor %vm1161_vm8, %vm1162_vm11 }
 0x31a   : > { %v1287_v59 = vmul.f32 %v2554_v39, %v1267_v55  ;;  %v1139_v61 = vsub.f32 1.5, %v1138_v37  ;;  %v1158_v62 = vmul.f32 0.5, %v1157_v56  ;;  %vm1171_vm14 = vweird.f32 %v2540_v32 }
 0x31b   : > { %v2584_v53 = vpop.eup %1804  ;;  %v1305_v63 = vadd.f32 %v2571_v49, %v1285_v40  ;;  %v1119_v3 = vsub.f32 1.5, %v1118_v58  ;;  %v2603_v21 = vadd.f32 1e-05, %v1080_v6  ;;  %vm1151_vm0 = vweird.f32 %v2547_v34 }
 0x31c   : > { %v1307_v9 = vadd.f32 %v2571_v49, %v1287_v59  ;;  %v1140_v10 = vmul.f32 %v2538_v30, %v1139_v61  ;;  %v1159_v11 = vsub.f32 1.5, %v1158_v62  ;;  %v1166_v15 = vmul.f32 %v2584_v53, %v2540_v32  ;;  %v2593_v16 = vpop.eup %1806 }
 0x31d   : > { %1321 = vst [vmem:[%s2291_s7] sm:$0xff] %v1305_v63  ;;  %v1120_v20 = vmul.f32 %v2542_v19, %v1119_v3  ;;  %v1146_v4 = vmul.f32 %v2593_v16, %v2547_v34  ;;  %v2613_v22 = vadd.f32 1e-05, %v1082_v7  ;;  %v2615_v8 = vpop.eup %1808  ;;  %1810 = vrsqrt.f32 %v2603_v21 }
 0x31e   : > { %1323 = vst [vmem:[%s2291_s7 + $0x10] sm:$0xff] %v1307_v9  ;;  %v1144_v60 = vsel %vm1143_vm12, %v2538_v30, %v1140_v10  ;;  %v1160_v17 = vmul.f32 %v2549_v38, %v1159_v11  ;;  %v1167_v30 = vmul.f32 %v2584_v53, %v1166_v15  ;;  %vm1172_vm3 = vweird.f32 %v2584_v53 }
 0x31f   : > { %v1268_v23 = vmul.f32 %v1144_v60, %v2444_v1  ;;  %v1124_v24 = vsel %vm1123_vm15, %v2542_v19, %v1120_v20  ;;  %v1147_v26 = vmul.f32 %v2593_v16, %v1146_v4  ;;  %v1186_v1 = vmul.f32 %v2615_v8, %v2560_v45  ;;  %vm1173_vm5 = vmor %vm1171_vm14, %vm1172_vm3 }
 0x320   : > { %v1266_v31 = vmul.f32 %v1124_v24, %v2447_v2  ;;  %v1164_v33 = vsel %vm1163_vm1, %v2549_v38, %v1160_v17  ;;  %v1168_v5 = vmul.f32 0.5, %v1167_v30  ;;  %v1062_v28 = vpop.xlane.xlu2 %1061  ;;  %v1066_v36 = vpop.xlane.xlu1 %1065  ;;  %1812 = vrsqrt.f32 %v2613_v22 }
 0x321   : > { %v1288_v19 = vmul.f32 %v2554_v39, %v1268_v23  ;;  %v1270_v44 = vmul.f32 %v1164_v33, %v2441_v0  ;;  %v1148_v2 = vmul.f32 0.5, %v1147_v26  ;;  %v1187_v38 = vmul.f32 %v2615_v8, %v1186_v1 }
 0x322   : > { %v1286_v46 = vmul.f32 %v2554_v39, %v1266_v31  ;;  %v1169_v52 = vsub.f32 1.5, %v1168_v5  ;;  %vm1152_vm4 = vweird.f32 %v2593_v16  ;;  %v1084_v58 = vmul.f32 %v1064_v43, %v2423_v47 }
 0x323   : > { %v1308_v50 = vadd.f32 %v2571_v49, %v1288_v19  ;;  %v1290_v51 = vmul.f32 %v2554_v39, %v1270_v44  ;;  %v1149_v55 = vsub.f32 1.5, %v1148_v2  ;;  %v1188_v37 = vmul.f32 0.5, %v1187_v38  ;;  %v2641_v56 = vpop.eup %1810  ;;  %vm1153_vm7 = vmor %vm1151_vm0, %vm1152_vm4 }
 0x324   : > { %v1306_v0 = vadd.f32 %v2571_v49, %v1286_v46  ;;  %v1170_v40 = vmul.f32 %v2584_v53, %v1169_v52  ;;  %v1083_v54 = vmul.f32 %v1062_v28, %v2423_v47  ;;  %vm1192_vm6 = vweird.f32 %v2615_v8 }
 0x325   : > { %1324 = vst [vmem:[%s2291_s7 + $0x18] sm:$0xff] %v1308_v50  ;;  %v1310_v57 = vadd.f32 %v2571_v49, %v1290_v51  ;;  %v1150_v59 = vmul.f32 %v2593_v16, %v1149_v55  ;;  %v1189_v61 = vsub.f32 1.5, %v1188_v37  ;;  %v1176_v62 = vmul.f32 %v2641_v56, %v2603_v21  ;;  %vm1193_vm8 = vmor %vm1191_vm2, %vm1192_vm6 }
 0x326   : > { %1322 = vst [vmem:[%s2291_s7 + $0x8] sm:$0xff] %v1306_v0  ;;  %v1174_v63 = vsel %vm1173_vm5, %v2584_v53, %v1170_v40  ;;  %v2663_v3 = vadd.f32 1e-05, %v1084_v58  ;;  %v2665_v6 = vadd.f32 1e-05, %v1083_v54  ;;  %v1085_v32 = vmul.f32 %v1066_v36, %v2423_v47  ;;  %v1813_v15 = vpop.eup %1812 }
 0x327   : > { %1326 = vst [vmem:[%s2291_s7 + $0x28] sm:$0xff] %v1310_v57  ;;  %v1154_v7 = vsel %vm1153_vm7, %v2593_v16, %v1150_v59  ;;  %v1271_v9 = vmul.f32 %v1174_v63, %v2465_v14  ;;  %v1190_v10 = vmul.f32 %v2615_v8, %v1189_v61  ;;  %v1177_v11 = vmul.f32 %v2641_v56, %v1176_v62  ;;  %v1070_v14 = vpop.xlane.xlu0 %1069 }
 0x328   : > { %v1269_v34 = vmul.f32 %v1154_v7, %v2459_v12  ;;  %1814 = vrsqrt.f32 %v2663_v3  ;;  %v1196_v16 = vmul.f32 %v1813_v15, %v2613_v22  ;;  %v1068_v17 = vpop.xlane.xlu2 %1067  ;;  %vm1182_vm9 = vweird.f32 %v2641_v56  ;;  %v1072_v30 = vpop.xlane.xlu1 %1071 }
 0x329   : > { %v1291_v53 = vmul.f32 %v2554_v39, %v1271_v9  ;;  %v1194_v20 = vsel %vm1193_vm8, %v2615_v8, %v1190_v10  ;;  %v1178_v60 = vmul.f32 0.5, %v1177_v11  ;;  %1816 = vrsqrt.f32 %v2665_v6 }
 0x32a   : > { %v1289_v4 = vmul.f32 %v2554_v39, %v1269_v34  ;;  %v1273_v23 = vmul.f32 %v1194_v20, %v2462_v13  ;;  %v1197_v24 = vmul.f32 %v1813_v15, %v1196_v16  ;;  %v2684_v8 = vadd.f32 1e-05, %v1085_v32 }
 0x32b   : > { %v1311_v12 = vadd.f32 %v2571_v49, %v1291_v53  ;;  %v1179_v45 = vsub.f32 1.5, %v1178_v60  ;;  %v1087_v26 = vmul.f32 %v1070_v14, %v2423_v47  ;;  %v1086_v13 = vmul.f32 %v1068_v17, %v2423_v47 }
 0x32c   : > { %v1309_v31 = vadd.f32 %v2571_v49, %v1289_v4  ;;  %v1293_v33 = vmul.f32 %v2554_v39, %v1273_v23  ;;  %vm1181_vm10 = vweird.f32 %v2603_v21  ;;  %v1198_v43 = vmul.f32 0.5, %v1197_v24 }
 0x32d   : > { %1327 = vst [vmem:[%s2291_s7 + $0x30] sm:$0xff] %v1311_v12  ;;  %v1180_v1 = vmul.f32 %v2641_v56, %v1179_v45  ;;  %1818 = vrsqrt.f32 %v2684_v8  ;;  %vm1183_vm11 = vmor %vm1181_vm10, %vm1182_vm9  ;;  %v2698_v5 = vadd.f32 1e-05, %v1087_v26  ;;  %v2700_v28 = vadd.f32 1e-05, %v1086_v13 }
 0x32e   : > { %v1815_v19 = vpop.eup %1814  ;;  %1325 = vst [vmem:[%s2291_s7 + $0x20] sm:$0xff] %v1309_v31  ;;  %v1313_v44 = vadd.f32 %v2571_v49, %v1293_v33  ;;  %v1088_v46 = vmul.f32 %v1072_v30, %v2423_v47  ;;  %v1199_v38 = vsub.f32 1.5, %v1198_v43  ;;  %vm1202_vm12 = vweird.f32 %v1813_v15 }
 0x32f   : > { %v1184_v2 = vsel %vm1183_vm11, %v2641_v56, %v1180_v1  ;;  %v1216_v21 = vmul.f32 %v1815_v19, %v2663_v3  ;;  %v1817_v36 = vpop.eup %1816  ;;  %1820 = vrsqrt.f32 %v2698_v5  ;;  %vm1201_vm13 = vweird.f32 %v2613_v22 }
 0x330   : > { %1329 = vst [vmem:[%s2291_s7 + $0x40] sm:$0xff] %v1313_v44  ;;  %v1272_v50 = vmul.f32 %v1184_v2, %v2476_v18  ;;  %v1200_v51 = vmul.f32 %v1813_v15, %v1199_v38  ;;  %v1206_v0 = vmul.f32 %v1817_v36, %v2665_v6  ;;  %vm1203_vm14 = vmor %vm1201_vm13, %vm1202_vm12  ;;  %1822 = vrsqrt.f32 %v2700_v28 }
 0x331   : > { %v1217_v52 = vmul.f32 %v1815_v19, %v1216_v21  ;;  %v2712_v55 = vadd.f32 1e-05, %v1088_v46  ;;  %vm1221_vm15 = vweird.f32 %v2663_v3  ;;  %vm1222_vm0 = vweird.f32 %v1815_v19 }
 0x332   : > { %v1292_v47 = vmul.f32 %v2554_v39, %v1272_v50  ;;  %v1204_v56 = vsel %vm1203_vm14, %v1813_v15, %v1200_v51  ;;  %v1207_v18 = vmul.f32 %v1817_v36, %v1206_v0  ;;  %vm1212_vm1 = vweird.f32 %v1817_v36  ;;  %vm1223_vm2 = vmor %vm1221_vm15, %vm1222_vm0 }
 0x333   : > { %v1819_v37 = vpop.eup %1818  ;;  %v1218_v57 = vmul.f32 0.5, %v1217_v52  ;;  %v1274_v58 = vmul.f32 %v1204_v56, %v2483_v29  ;;  %1824 = vrsqrt.f32 %v2712_v55  ;;  %vm1211_vm3 = vweird.f32 %v2665_v6 }
 0x334   : > { %v1312_v40 = vadd.f32 %v2571_v49, %v1292_v47  ;;  %v1226_v22 = vmul.f32 %v1819_v37, %v2684_v8  ;;  %v1208_v59 = vmul.f32 0.5, %v1207_v18  ;;  %vm1213_vm4 = vmor %vm1211_vm3, %vm1212_vm1  ;;  %vm1232_vm5 = vweird.f32 %v1819_v37 }
 0x335   : > { %v1219_v54 = vsub.f32 1.5, %v1218_v57  ;;  %v1821_v61 = vpop.eup %1820  ;;  %v1294_v62 = vmul.f32 %v2554_v39, %v1274_v58  ;;  %vm1231_vm6 = vweird.f32 %v2684_v8  ;;  %vm1251_vm8 = vweird.f32 %v2698_v5 }
 0x336   : > { %1328 = vst [vmem:[%s2291_s7 + $0x38] sm:$0xff] %v1312_v40  ;;  %v1227_v63 = vmul.f32 %v1819_v37, %v1226_v22  ;;  %v1209_v7 = vsub.f32 1.5, %v1208_v59  ;;  %v1246_v29 = vmul.f32 %v1821_v61, %v2698_v5  ;;  %v1823_v9 = vpop.eup %1822  ;;  %vm1233_vm7 = vmor %vm1231_vm6, %vm1232_vm5  ;;  %vm1252_vm9 = vweird.f32 %v1821_v61 }
 0x337   : > { %v1220_v32 = vmul.f32 %v1815_v19, %v1219_v54  ;;  %v1314_v10 = vadd.f32 %v2571_v49, %v1294_v62  ;;  %v1236_v20 = vmul.f32 %v1823_v9, %v2700_v28  ;;  %vm1242_vm10 = vweird.f32 %v1823_v9  ;;  %vm1253_vm11 = vmor %vm1251_vm8, %vm1252_vm9 }
 0x338   : > { %v1228_v11 = vmul.f32 0.5, %v1227_v63  ;;  %v1210_v34 = vmul.f32 %v1817_v36, %v1209_v7  ;;  %v1247_v53 = vmul.f32 %v1821_v61, %v1246_v29  ;;  %vm1241_vm12 = vweird.f32 %v2700_v28 }
 0x339   : > { %v1224_v15 = vsel %vm1223_vm2, %v1815_v19, %v1220_v32  ;;  %1330 = vst [vmem:[%s2291_s7 + $0x48] sm:$0xff] %v1314_v10  ;;  %v1825_v14 = vpop.eup %1824  ;;  %v1237_v4 = vmul.f32 %v1823_v9, %v1236_v20  ;;  %vm1243_vm13 = vmor %vm1241_vm12, %vm1242_vm10  ;;  %vm1261_vm15 = vweird.f32 %v2712_v55 }
 0x33a   : > { %v1276_v60 = vmul.f32 %v1224_v15, %v2480_v25  ;;  %v1229_v16 = vsub.f32 1.5, %v1228_v11  ;;  %v1214_v17 = vsel %vm1213_vm4, %v1817_v36, %v1210_v34  ;;  %v1248_v3 = vmul.f32 0.5, %v1247_v53 }
 0x33b   : > { %v1275_v23 = vmul.f32 %v1214_v17, %v2494_v27  ;;  %v1256_v45 = vmul.f32 %v1825_v14, %v2712_v55  ;;  %v1238_v25 = vmul.f32 0.5, %v1237_v4  ;;  %vm1262_vm14 = vweird.f32 %v1825_v14 }
 0x33c   : > { %v1296_v6 = vmul.f32 %v2554_v39, %v1276_v60  ;;  %v1230_v12 = vmul.f32 %v1819_v37, %v1229_v16  ;;  %v1249_v24 = vsub.f32 1.5, %v1248_v3  ;;  %vm1263_vm0 = vmor %vm1261_vm15, %vm1262_vm14 }
 0x33d   : > { %v1295_v8 = vmul.f32 %v2554_v39, %v1275_v23  ;;  %v1257_v33 = vmul.f32 %v1825_v14, %v1256_v45  ;;  %v1239_v13 = vsub.f32 1.5, %v1238_v25 }
 0x33e   : > { %v1316_v30 = vadd.f32 %v2571_v49, %v1296_v6  ;;  %v1234_v31 = vsel %vm1233_vm7, %v1819_v37, %v1230_v12  ;;  %v1250_v27 = vmul.f32 %v1821_v61, %v1249_v24 }
 0x33f   : > { %v1277_v26 = vmul.f32 %v1234_v31, %v2501_v42  ;;  %v1315_v1 = vadd.f32 %v2571_v49, %v1295_v8  ;;  %v1258_v43 = vmul.f32 0.5, %v1257_v33  ;;  %v1240_v5 = vmul.f32 %v1823_v9, %v1239_v13 }
 0x340   : > { %1332 = vst [vmem:[%s2291_s7 + $0x58] sm:$0xff] %v1316_v30  ;;  %v1254_v44 = vsel %vm1253_vm11, %v1821_v61, %v1250_v27 }
 0x341   : > { %v1297_v19 = vmul.f32 %v2554_v39, %v1277_v26  ;;  %1331 = vst [vmem:[%s2291_s7 + $0x50] sm:$0xff] %v1315_v1  ;;  %v1279_v46 = vmul.f32 %v1254_v44, %v2498_v41  ;;  %v1259_v42 = vsub.f32 1.5, %v1258_v43  ;;  %v1244_v38 = vsel %vm1243_vm13, %v1823_v9, %v1240_v5 }
 0x342   : > { %v1278_v36 = vmul.f32 %v1244_v38, %v2511_v35 }
 0x343   : > { %v1317_v2 = vadd.f32 %v2571_v49, %v1297_v19  ;;  %v1299_v21 = vmul.f32 %v2554_v39, %v1279_v46  ;;  %v1260_v50 = vmul.f32 %v1825_v14, %v1259_v42 }
 0x344   : > { %v1298_v28 = vmul.f32 %v2554_v39, %v1278_v36 }
 0x345   : > { %1333 = vst [vmem:[%s2291_s7 + $0x60] sm:$0xff] %v1317_v2  ;;  %v1319_v41 = vadd.f32 %v2571_v49, %v1299_v21  ;;  %v1264_v51 = vsel %vm1263_vm0, %v1825_v14, %v1260_v50 }
 0x346   : > { %v1280_v52 = vmul.f32 %v1264_v51, %v2515_v48  ;;  %v1318_v0 = vadd.f32 %v2571_v49, %v1298_v28 }
 0x347   : > { %1335 = vst [vmem:[%s2291_s7 + $0x70] sm:$0xff] %v1319_v41 }
 0x348   : > { %v1300_v47 = vmul.f32 %v2554_v39, %v1280_v52  ;;  %1334 = vst [vmem:[%s2291_s7 + $0x68] sm:$0xff] %v1318_v0 }
 0x34a   : > { %v1320_v35 = vadd.f32 %v2571_v49, %v1300_v47 }
 0x34c   : > { %1336 = vst [vmem:[%s2291_s7 + $0x78] sm:$0xff] %v1320_v35 }
 0x34d PF: > { %s2857_s9 = sld [smem:[#allocation16_spill]]  ;;  %s1350_s10 = sshll.u32 %s2291_s7, 4  ;;  %s1351_s10 = int_to_ptr.vmem [resolvable:$true] %s1350_s10 }
 0x34e   : > { %s2859_s25 = sld [smem:[#allocation27_spill]]  ;;  %s1338_s21 = scalar_lea.sflag [#allocation5], %s2271_s27 }
 0x353   : > { %s1668_s16 = sshll.u32 %s2857_s9, 7 }
 0x354   : > { %s2860_s15 = smov %s2859_s25  ;;  %s1349_s20 = scalar_lea.hbm %s2859_s25, %s1668_s16 }
 0x355   : > { %s1352_s3 = sshll.u32 %s1349_s20, 4  ;;  %s1936_s11 = scalar_lea.hbm %s2860_s15, 384  ;;  %s1353_s3 = int_to_ptr.hbm [resolvable:$true] %s1352_s3 }
 0x356   : > { %s1930_s23 = sshra.s32 %s1353_s3, 4  ;;  %s1931_s23 = int_to_ptr.hbm [resolvable:$true] %s1930_s23 }
 0x357   : > { %s1932_s12 = scalar_lea.hbm %s1931_s23, 128  ;;  %p1937_p4 = scmp.lt.s32.totalorder %s1931_s23, %s2860_s15 }
 0x358   : > { %p1933_p10 = scmp.ne.s32.totalorder %s1931_s23, %s1932_s12  ;;  %p1938_p6 = scmp.lt.s32.totalorder %s1936_s11, %s1932_s12 }
 0x35a   : > { %p1934_p12 = pnand %p1933_p10, %p2234_p0  ;;  %p1939_p8 = por %p1938_p6, %p1937_p4 }
 0x35c   : > { %p1935_p2 = pneg %p1934_p12 }
 0x35e   : > { %p1940_p1 = pnand %p1939_p8, %p1935_p2 }
 0x360   : > { %1943 = shalt.err (!%p1940_p1)
}
 0x361   : > { %s2051_s27 = smov 128   ;;  %s2052_s7 = smov 8  }
 0x362   : > { %1675 = dma.vmem_to_hbm [thread:$0]  (%p2234_p0), %s1351_s10, 2048, %s1353_s3, %s1338_s21, %s2051_s27, %s2051_s27, %s2052_s7  }
 0x363 PF: > { %s2861_s14 = sld [smem:[#allocation14_spill]]  ;;  %p1692_p9 = scmp.ge.s32.totalorder %s2042_s28, 2 }
 0x365   : > { %p1688_p13 = pnand %p1692_p9, %p2246_p3 }
 0x367   : > { %p1689_p11 = pneg %p1688_p13 }
 0x369   : > { %s1367_s30 = sand.u32 1, %s2861_s14  }
 0x36a   : > { %s1368_s17 = scalar_lea.sflag [#allocation5], %s1367_s30 }
 0x36b   : > { %1997 = dma.done.wait (%p1689_p11), %s1368_s17, 2048  }
 0x36c   : > { %1999 = vsyncadd (%p1689_p11), %s1368_s17, 4294965248  ;;  %s24_s28 = sadd.s32 1, %s2042_s28   ;;  %s2863_s9 = sld [smem:[#allocation13_spill]] }
 0x36d   : > { %p21_p5 = scmp.ge.s32.totalorder %s24_s28, 8   ;;  %s2864_s20 = sld [smem:[#allocation19_spill]] }
 0x36e   : > { %s2865_s29 = sld [smem:[#allocation15_spill]]  ;;  %s2870_s18 = smov %s2006_s19 }
 0x36f   : > { %s2866_s23 = sld [smem:[#allocation22_spill]]  ;;  %s2872_s21 = smov %s2018_s22 }
 0x370   : > { %s2867_s25 = sld [smem:[#allocation17_spill]]  ;;  %s2874_s24 = smov %s2034_s26 }
 0x371   : > { %s2868_s16 = sld [smem:[#allocation18_spill]] }
 0x372   : > { %s2869_s27 = sld [smem:[#allocation20_spill]]  ;;  %s2871_s19 = smov %s2863_s9 }
 0x373   :  { %23 = sbr.rel (!%p21_p5) target bundleno = 16 (0x10), region = 117 }
 0x374   : > { %s2873_s22 = smov %s2865_s29 }
 0x377   : > { %s2875_s26 = smov %s2868_s16 }
 0x378   :  { %1374 = vsyncpa [#allocation4], 1 }
 0x379   :  { %1376 = vsyncpa [#allocation4 + $0x1], 1 }
 0x37a   :  { %1377 = vsyncpa [#allocation7], 1 }
 0x37b   :  { %1379 = vsyncpa [#allocation7 + $0x1], 1 }
 0x37c   :  { %1380 = vsyncpa [#allocation5], 1 }
 0x37d   :  { %1382 = vsyncpa [#allocation5 + $0x1], 1 }

</bundles_post_ra>
